<compile_context>
chip_gen: v7x
topology: tpu7x:2x2x1
jax: 0.10.0
libtpu: 0.0.40
codegen_flags: <defaults>
</compile_context>

<pallas_src>
import math

import numpy as np
import jax
import jax.numpy as jnp
from jax import lax
from jax.experimental import pallas as pl
from jax.experimental.pallas import tpu as pltpu

# ----------------------------- small test dims -----------------------------
CODE_NUM = 16          # code_num
GRAPH    = 32          # graph_size
HIDDEN   = 32          # hidden_size
T_ATTN   = 32          # t_attention_size
T_OUT    = HIDDEN      # t_output_size (must equal hidden_size)
NOTE     = 64          # note_size (768 in the module default; kept small here)
N_ATTN   = 16          # n_attention_size (per-head)
HEADS    = 4           # n_attention_heads
HA       = HEADS * N_ATTN
LN_EPS   = 1e-5
LEAKY    = 0.01        # nn.LeakyReLU default slope
NEG      = -1e9        # additive mask value

XW = 3 * GRAPH + HIDDEN            # 128 : per-row lanes [co | h0 | no | un]

# ---------------- fused GEMM column layout (one K=128 push off x) ------------
C_R   = 0                       # r-gate pre-act  (W_ir co + W_hr h0, both biases folded)
C_Z   = C_R + HIDDEN            # z-gate pre-act
C_GIN = C_Z + HIDDEN            # n-gate input half   (W_in co + b_in)
C_GHN = C_GIN + HIDDEN          # n-gate hidden half  (W_hn h0 + b_hn)
C_V   = C_GHN + HIDDEN          # t-attn value        (W_v co + b_v)
C_QNO = C_V + T_OUT             # t-attn Q from `no`
C_KNO = C_QNO + T_ATTN          # t-attn K from `no`  (1/sqrt(T_ATTN) folded)
C_QUN = C_KNO + T_ATTN          # t-attn Q from `un`
C_KUN = C_QUN + T_ATTN          # t-attn K from `un`
NBIG  = C_KUN + T_ATTN          # 288 used columns

# --------------------- packed-weight blob layout (static) -------------------
R_WBIG = 0                           # (XW  , NBIG) fused GRU / t-attn projection
R_WKV  = R_WBIG + XW                 # (H   , 2*HA) [W_k_n^T | W_v_n^T]
R_WQN  = R_WKV + HIDDEN              # (NOTE, HA)   W_q_n^T
R_WON  = R_WQN + NOTE                # (HA  , H)    W_o_n^T
R_SEL  = R_WON + HA                  # (HA  , HA)   block-diag head-sum / sqrt(N_ATTN)
R_B    = R_SEL + HA                  # bias / LN rows
WROWS  = R_B + 8
WROWS_PAD = ((WROWS + 15) // 16) * 16        # bf16 sublane tile = 16
WCOLS  = ((NBIG + 127) // 128) * 128         # 384


# ------------------------------- the kernel --------------------------------
def _tna_kernel(x_ref, aux_ref, mc_ref, wp_ref, out_ref):
    f32, bf16 = jnp.float32, jnp.bfloat16
    S = x_ref.shape[0]
    N, G, H = CODE_NUM, GRAPH, HIDDEN
    M = S * N

    x = x_ref[...]                                  # (S, N, 128) f32: [co | h0 | no | un]
    xr = x.reshape(M, XW)                           # sublane-aligned collapse (free)
    xf = xr.astype(bf16)
    h0 = xr[:, G:G + H]                             # f32 copy for the GRU blend

    mc = mc_ref[...]                                # (S, N, 4) column masks
    m1_c  = mc[:, :, 0:1] > 0.0
    m2_c  = mc[:, :, 1:2] > 0.0
    m23_c = mc[:, :, 2:3] > 0.0
    am_c  = mc[:, :, 3:4] > 0.0

    aux = aux_ref[...]                              # (S, 8, 128): row0=note, row1=m23 row
    m23_r = aux[:, 1:2, 0:N] > 0.0                  # (S, 1, N) key mask (row form)

    # ---- packed weights: VMEM-resident bf16 blob, tile-aligned static slices ----
    Wbig = wp_ref[R_WBIG:R_WBIG + XW, :]            # (128, 384)
    Wkv  = wp_ref[R_WKV:R_WKV + H, 0:2 * HA]        # (32, 128) [Wk_n^T | Wv_n^T]
    Wqn  = wp_ref[R_WQN:R_WQN + NOTE, 0:2 * HA]     # (64, 128) [Wq_n^T | 0]
    Won  = wp_ref[R_WON:R_WON + HA, 0:2 * HA]       # (64, 128) [Wo_n^T | 0]
    Wsel = wp_ref[R_SEL:R_SEL + HA, 0:2 * HA]       # (64, 128) [head-sum/sqrt(A) | 0]
    bias = wp_ref[R_B:R_B + 8, :].astype(f32)       # (8, 384)
    b_big = bias[0:1, :]
    b_kv  = bias[1:2, 0:2 * HA]
    b_qn  = bias[2:3, 0:HA]
    b_on  = bias[3:4, 0:H]
    gam   = bias[4:5, 0:H]
    bet   = bias[5:6, 0:H]

    # ---- one fused GEMM: GRU ih+hh gates, t-attn V and both (no/un) Q/K branches ----
    y = jnp.dot(xf, Wbig, preferred_element_type=f32) + b_big        # (M, 384)
    r = jax.nn.sigmoid(y[:, C_R:C_R + H])
    z = jax.nn.sigmoid(y[:, C_Z:C_Z + H])
    n = jnp.tanh(y[:, C_GIN:C_GIN + H] + r * y[:, C_GHN:C_GHN + H])
    h_m1 = ((1.0 - z) * n + z * h0).reshape(S, N, H)                 # (S, N, H)

    # ---- single-head attention over m2 U m3 subset (mask-equivalent) ----
    qno = y[:, C_QNO:C_QNO + T_ATTN].reshape(S, N, T_ATTN)
    qun = y[:, C_QUN:C_QUN + T_ATTN].reshape(S, N, T_ATTN)
    kno = y[:, C_KNO:C_KNO + T_ATTN].reshape(S, N, T_ATTN)
    kun = y[:, C_KUN:C_KUN + T_ATTN].reshape(S, N, T_ATTN)
    q3 = jnp.where(m2_c, qno, qun).astype(bf16)                      # no[m2] / un[m3]
    k3 = jnp.where(m2_c, kno, kun).astype(bf16)
    v3 = y[:, C_V:C_V + T_OUT].reshape(S, N, T_OUT).astype(bf16)
    sc = jnp.einsum("sqt,skt->sqk", q3, k3,
                    preferred_element_type=f32)                      # (S, N, N)
    sc = jnp.where(m23_r, sc, NEG)
    sc = sc - jnp.max(sc, axis=-1, keepdims=True)
    e = jnp.exp(sc)
    p = e * pl.reciprocal(jnp.sum(e, axis=-1, keepdims=True), approx=True)
    h_m23 = jnp.tanh(jnp.einsum("sqk,skd->sqd", p.astype(bf16), v3,
                                preferred_element_type=f32))         # (S, N, T_OUT)

    # ---- scatter into h_new (m2/m3 rows overwrite m1 rows, as in torch) ----
    h_new = jnp.where(m23_c, h_m23, jnp.where(m1_c, h_m1, 0.0))      # (S, N, H)
    out_ref[:, 0:N, :] = h_new

    # ---- multi-head note attention (qlen=1): block-diag head-sum + axis-1 softmax ----
    y3 = jnp.dot(h_new.reshape(M, H).astype(bf16), Wkv,
                 preferred_element_type=f32) + b_kv                  # (M, 128)
    nk = y3[:, 0:HA]                                                 # (M, HA)
    nv3 = y3[:, HA:2 * HA].reshape(S, N, HA)
    # note is per-sample; broadcast across the N key rows so the Q projection stays a
    # plain (M, NOTE) x (NOTE, HA) MXU dot (no (S, C) relayouts).  Redundant FLOPs are
    # negligible and the MXU is idle anyway.
    note_bc = jnp.broadcast_to(aux[:, 0:1, 0:NOTE], (S, N, NOTE)).reshape(M, NOTE)
    nq = jnp.dot(note_bc.astype(bf16), Wqn,
                 preferred_element_type=f32)[:, 0:HA] + b_qn         # (M, HA)
    prod = nq * nk                                                   # (M, HA) VPU
    s = jnp.dot(prod.astype(bf16), Wsel,
                preferred_element_type=f32)[:, 0:HA].reshape(S, N, HA)
    s = jnp.where(am_c, s, NEG)                                      # per-key mask
    s = s - jnp.max(s, axis=1, keepdims=True)
    e3 = jnp.exp(s)
    pw = e3 * pl.reciprocal(jnp.sum(e3, axis=1, keepdims=True), approx=True)
    # apply the output projection before the key-reduction: ctx @ Wo == sum_k (pw*nv) @ Wo
    t_flat = (pw * nv3).reshape(M, HA)
    o_rows = jnp.dot(t_flat.astype(bf16), Won,
                     preferred_element_type=f32)[:, 0:H].reshape(S, N, H)
    o = jnp.sum(o_rows, axis=1, keepdims=True) + b_on                # (S, 1, H)

    mu = jnp.mean(o, axis=-1, keepdims=True)
    d = o - mu
    var = jnp.mean(d * d, axis=-1, keepdims=True)
    o = d * lax.rsqrt(var + LN_EPS) * gam + bet
    o = jnp.where(o > 0.0, o, LEAKY * o)
    out_ref[:, N:N + 1, :] = o


# ----------------------- one-time host weight packing ------------------------
def pack_weights(p):
    wp = np.zeros((WROWS_PAD, WCOLS), np.float32)
    inv_t = 1.0 / math.sqrt(T_ATTN)
    inv_a = 1.0 / math.sqrt(N_ATTN)
    A = lambda v: np.asarray(v, np.float32)
    G, H = GRAPH, HIDDEN
    w_ih, w_hh = A(p["gru.w_ih"]), A(p["gru.w_hh"])
    b_ih, b_hh = A(p["gru.b_ih"]), A(p["gru.b_hh"])

    # fused per-row GEMM: LHS lanes [co | h0 | no | un] -> NBIG columns
    r0, r1, r2, r3 = 0, G, G + H, 2 * G + H
    wp[r0:r0 + G, C_R:C_R + H]       = w_ih[0:H].T
    wp[r0:r0 + G, C_Z:C_Z + H]       = w_ih[H:2 * H].T
    wp[r0:r0 + G, C_GIN:C_GIN + H]   = w_ih[2 * H:3 * H].T
    wp[r0:r0 + G, C_V:C_V + T_OUT]   = A(p["t.wv"]).T
    wp[r1:r1 + H, C_R:C_R + H]       = w_hh[0:H].T
    wp[r1:r1 + H, C_Z:C_Z + H]       = w_hh[H:2 * H].T
    wp[r1:r1 + H, C_GHN:C_GHN + H]   = w_hh[2 * H:3 * H].T
    wp[r2:r2 + G, C_QNO:C_QNO + T_ATTN] = A(p["t.wq"]).T
    wp[r2:r2 + G, C_KNO:C_KNO + T_ATTN] = A(p["t.wk"]).T * inv_t
    wp[r3:r3 + G, C_QUN:C_QUN + T_ATTN] = A(p["t.wq"]).T
    wp[r3:r3 + G, C_KUN:C_KUN + T_ATTN] = A(p["t.wk"]).T * inv_t

    wp[R_WKV:R_WKV + H, 0:HA]        = A(p["n.wk"]).T
    wp[R_WKV:R_WKV + H, HA:2 * HA]   = A(p["n.wv"]).T
    wp[R_WQN:R_WQN + NOTE, 0:HA]     = A(p["n.wq"]).T
    wp[R_WON:R_WON + HA, 0:H]        = A(p["n.wo"]).T
    head = np.arange(HA) // N_ATTN
    wp[R_SEL:R_SEL + HA, 0:HA] = (head[:, None] == head[None, :]).astype(np.float32) * inv_a

    # bias / LayerNorm rows (scale folding done in f32, before the bf16 cast)
    wp[R_B + 0, C_R:C_R + H]         = b_ih[0:H] + b_hh[0:H]
    wp[R_B + 0, C_Z:C_Z + H]         = b_ih[H:2 * H] + b_hh[H:2 * H]
    wp[R_B + 0, C_GIN:C_GIN + H]     = b_ih[2 * H:3 * H]
    wp[R_B + 0, C_GHN:C_GHN + H]     = b_hh[2 * H:3 * H]
    wp[R_B + 0, C_V:C_V + T_OUT]     = A(p["t.bv"])
    wp[R_B + 0, C_QNO:C_QNO + T_ATTN] = A(p["t.bq"])
    wp[R_B + 0, C_KNO:C_KNO + T_ATTN] = A(p["t.bk"]) * inv_t
    wp[R_B + 0, C_QUN:C_QUN + T_ATTN] = A(p["t.bq"])
    wp[R_B + 0, C_KUN:C_KUN + T_ATTN] = A(p["t.bk"]) * inv_t
    wp[R_B + 1, 0:HA]        = A(p["n.bk"])
    wp[R_B + 1, HA:2 * HA]   = A(p["n.bv"])
    wp[R_B + 2, 0:HA]        = A(p["n.bq"])
    wp[R_B + 3, 0:HIDDEN]    = A(p["n.bo"])
    wp[R_B + 4, 0:HIDDEN]    = A(p["ln.g"])
    wp[R_B + 5, 0:HIDDEN]    = A(p["ln.b"])
    return jnp.asarray(wp, dtype=jnp.bfloat16)     # bf16 blob: MXU-native, half the DMA


# ------------------------------ pallas wrapper --------------------------------
def _pick_block(B):
    # Largest per-step sample count that still leaves >=2 grid steps, so both v7x
    # TensorCores get work; fall back to one step holding the whole batch.
    for s in (32, 16, 8, 4, 2, 1):
        if B % s == 0 and B // s >= 2:
            return s
    return B


def _pallas_forward(x, aux, maskc, wpack):
    B = x.shape[0]
    S = _pick_block(B)
    steps = B // S

    per_sample_flops = 2 * (CODE_NUM * XW * WCOLS
                            + CODE_NUM * CODE_NUM * T_ATTN
                            + CODE_NUM * CODE_NUM * T_OUT
                            + CODE_NUM * HIDDEN * 2 * HA
                            + CODE_NUM * NOTE * 2 * HA
                            + CODE_NUM * HA * 2 * HA
                            + CODE_NUM * HA * 2 * HA)
    flops = B * per_sample_flops
    trans = B * (2 * CODE_NUM * HIDDEN + CODE_NUM * HIDDEN + CODE_NUM * T_OUT
                 + CODE_NUM * CODE_NUM + CODE_NUM * HA + CODE_NUM + HA + 1)
    bytes_acc = (4 * (x.size + aux.size + maskc.size)
                 + 2 * wpack.size
                 + 4 * B * (CODE_NUM + 1) * HIDDEN)

    return pl.pallas_call(
        _tna_kernel,
        out_shape=jax.ShapeDtypeStruct((B, CODE_NUM + 1, HIDDEN), jnp.float32),
        grid=(steps,),
        in_specs=[
            pl.BlockSpec((S, CODE_NUM, XW), lambda g: (g, 0, 0)),       # [co|h0|no|un]
            pl.BlockSpec((S, 8, 128), lambda g: (g, 0, 0)),             # note + m23 row
            pl.BlockSpec((S, CODE_NUM, 4), lambda g: (g, 0, 0)),        # column masks
            pl.BlockSpec((WROWS_PAD, WCOLS), lambda g: (0, 0)),         # weights: resident
        ],
        out_specs=pl.BlockSpec((S, CODE_NUM + 1, HIDDEN), lambda g: (g, 0, 0)),
        compiler_params=pltpu.CompilerParams(dimension_semantics=("parallel",)),
        cost_estimate=pl.CostEstimate(flops=flops, transcendentals=trans,
                                      bytes_accessed=bytes_acc),
    )(x, aux, maskc, wpack)


@jax.jit
def forward_batched(ts, co, divided, no, un, note, hidden, wpack):
    """ts:(B,), co/no/un:(B,N,G), divided:(B,N,3), note:(B,1,NOTE), hidden:(B,N,H)."""
    B = co.shape[0]
    x = jnp.concatenate([co, hidden, no, un], axis=-1)          # (B, N, 128) lane-dense
    m1 = divided[..., 0] > 0
    m2 = divided[..., 1] > 0
    m3 = divided[..., 2] > 0
    tpos = (ts > 0)[:, None]
    m23 = jnp.logical_and(jnp.logical_or(m2, m3), tpos)
    am = jnp.logical_or(m1, m23)
    maskc = jnp.stack([m1, m2, m23, am], axis=-1).astype(jnp.float32)   # (B, N, 4)
    aux = jnp.zeros((B, 8, 128), jnp.float32)
    aux = aux.at[:, 0, 0:NOTE].set(note[:, 0, :])
    aux = aux.at[:, 1, 0:CODE_NUM].set(m23.astype(jnp.float32))
    out = _pallas_forward(x, aux, maskc, wpack)                 # (B, N+1, H) merged slab
    return out[:, CODE_NUM, :], out[:, 0:CODE_NUM, :]


# ------------------------- deterministic parameters -------------------------
def init_params(key):
    def w(k, shape, scale=0.1):
        return (scale * jax.random.normal(k, shape)).astype(jnp.float32)
    ks = jax.random.split(key, 18)
    return {
        "gru.w_ih": w(ks[0], (3 * HIDDEN, GRAPH)),
        "gru.w_hh": w(ks[1], (3 * HIDDEN, HIDDEN)),
        "gru.b_ih": w(ks[2], (3 * HIDDEN,)),
        "gru.b_hh": w(ks[3], (3 * HIDDEN,)),
        "t.wq": w(ks[4], (T_ATTN, GRAPH)), "t.bq": w(ks[5], (T_ATTN,)),
        "t.wk": w(ks[6], (T_ATTN, GRAPH)), "t.bk": w(ks[7], (T_ATTN,)),
        "t.wv": w(ks[8], (T_OUT, GRAPH)),  "t.bv": w(ks[9], (T_OUT,)),
        "n.wq": w(ks[10], (HA, NOTE)),   "n.bq": w(ks[11], (HA,)),
        "n.wk": w(ks[12], (HA, HIDDEN)), "n.bk": w(ks[13], (HA,)),
        "n.wv": w(ks[14], (HA, HIDDEN)), "n.bv": w(ks[15], (HA,)),
        "n.wo": w(ks[16], (HIDDEN, HA)), "n.bo": w(ks[17], (HIDDEN,)),
        "ln.g": jnp.ones((HIDDEN,), jnp.float32),
        "ln.b": jnp.zeros((HIDDEN,), jnp.float32),
    }


# ------------------- numpy reference (torch-style gathers) -------------------
def reference_forward(t, co, divided, no, un, note, hidden, params):
    A = lambda v: np.asarray(v, dtype=np.float64)
    sigmoid = lambda v: 1.0 / (1.0 + np.exp(-v))

    def softmax(v, axis=-1):
        v = v - v.max(axis=axis, keepdims=True)
        e = np.exp(v)
        return e / e.sum(axis=axis, keepdims=True)

    co, no, un, note, hidden, divided = map(A, (co, no, un, note, hidden, divided))
    P = {k: A(v) for k, v in params.items()}
    H = HIDDEN
    m1 = np.where(divided[:, 0] > 0)[0]
    m2 = np.where(divided[:, 1] > 0)[0]
    m3 = np.where(divided[:, 2] > 0)[0]
    h_new = np.zeros((CODE_NUM, HIDDEN))
    attn_mask = np.zeros(CODE_NUM)
    if len(m1) > 0:
        x, h0 = co[m1], hidden[m1]
        gi = x @ P["gru.w_ih"].T + P["gru.b_ih"]
        gh = h0 @ P["gru.w_hh"].T + P["gru.b_hh"]
        r = sigmoid(gi[:, :H] + gh[:, :H])
        z = sigmoid(gi[:, H:2 * H] + gh[:, H:2 * H])
        n = np.tanh(gi[:, 2 * H:] + r * gh[:, 2 * H:])
        h_new[m1] = (1 - z) * n + z * h0
        attn_mask[m1] = 1
    if t > 0 and len(m2) + len(m3) > 0:
        q = np.vstack([no[m2], un[m3]])
        v = np.vstack([co[m2], co[m3]])
        qp = q @ P["t.wq"].T + P["t.bq"]
        kp = q @ P["t.wk"].T + P["t.bk"]
        vp = v @ P["t.wv"].T + P["t.bv"]
        score = softmax(qp @ kp.T / math.sqrt(T_ATTN), axis=-1)
        hm = np.tanh(score @ vp)
        h_new[m2] = hm[:len(m2)]
        h_new[m3] = hm[len(m2):]
        attn_mask[m2] = 1
        attn_mask[m3] = 1
    nq = note @ P["n.wq"].T + P["n.bq"]
    nk = h_new @ P["n.wk"].T + P["n.bk"]
    nv = h_new @ P["n.wv"].T + P["n.bv"]
    outs = []
    for hh in range(HEADS):
        lo = hh * N_ATTN
        qh, kh, vh = nq[:, lo:lo + N_ATTN], nk[:, lo:lo + N_ATTN], nv[:, lo:lo + N_ATTN]
        s = qh @ kh.T / math.sqrt(N_ATTN)
        s = np.where(attn_mask[None, :] > 0, s, NEG)
        outs.append(softmax(s, -1) @ vh)
    ctx = np.concatenate(outs, -1)
    o = ctx @ P["n.wo"].T + P["n.bo"]
    mu = o.mean(-1, keepdims=True)
    var = ((o - mu) ** 2).mean(-1, keepdims=True)
    o = (o - mu) / np.sqrt(var + LN_EPS) * P["ln.g"] + P["ln.b"]
    return np.where(o > 0, o, LEAKY * o), h_new


# ---------------------------------- main ------------------------------------
if __name__ == "__main__":
    B = 8
    key = jax.random.PRNGKey(0)
    kp, kd = jax.random.split(key)
    params = init_params(kp)
    wpack = pack_weights(params)        # packed once at init (not per call)

    ks = jax.random.split(kd, 5)
    co     = jax.random.normal(ks[0], (B, CODE_NUM, GRAPH), jnp.float32)
    no     = jax.random.normal(ks[1], (B, CODE_NUM, GRAPH), jnp.float32)
    un     = jax.random.normal(ks[2], (B, CODE_NUM, GRAPH), jnp.float32)
    note   = jax.random.normal(ks[3], (B, 1, NOTE), jnp.float32)
    hidden = jax.random.normal(ks[4], (B, CODE_NUM, HIDDEN), jnp.float32)

    # deterministic `divided` / `t`: cycle rows through {m1, m2, m3, none};
    # last sample has no flagged rows; some samples have t == 0.
    divided_np = np.zeros((B, CODE_NUM, 3), np.float32)
    for bb in range(B):
        if bb == B - 1:
            continue                                      # degenerate: all masks empty
        for i in range(CODE_NUM):
            c = (i + bb) % 4
            if c < 3:
                divided_np[bb, i, c] = 1.0
    ts_np = np.array([bb % 3 for bb in range(B)], np.int32)  # includes t == 0 samples

    divided = jnp.asarray(divided_np)
    ts = jnp.asarray(ts_np)

    out, h_new = forward_batched(ts, co, divided, no, un, note, hidden, wpack)
    jax.block_until_ready((out, h_new))

    out_np, h_new_np = np.asarray(out), np.asarray(h_new)
    co_np, no_np, un_np = np.asarray(co), np.asarray(no), np.asarray(un)
    note_np, hid_np = np.asarray(note), np.asarray(hidden)
    out_ref = np.zeros((B, HIDDEN))
    h_new_ref = np.zeros((B, CODE_NUM, HIDDEN))
    for bb in range(B):
        o_r, h_r = reference_forward(int(ts_np[bb]), co_np[bb], divided_np[bb],
                                     no_np[bb], un_np[bb], note_np[bb], hid_np[bb], params)
        out_ref[bb] = o_r[0]
        h_new_ref[bb] = h_r

    # h_new sees only one bf16 GEMM layer -> tight tolerance; the final LayerNorm output
    # accumulates bf16-MXU + approx-reciprocal error through four GEMM layers -> 3e-2.
    assert np.allclose(h_new_np, h_new_ref, rtol=2e-2, atol=2e-2), "h_new mismatch"
    assert np.allclose(out_np, out_ref, rtol=3e-2, atol=3e-2), "output mismatch"
    print("KERNEL_OK")
</pallas_src>

<mosaic_0001>
module attributes {stable_mosaic.version = 11 : i64} {
  func.func @_tna_kernel(%arg0: i32, %arg1: memref<4x16x128xf32, #tpu.memory_space<vmem>>, %arg2: memref<4x8x128xf32, #tpu.memory_space<vmem>>, %arg3: memref<4x16x4xf32, #tpu.memory_space<vmem>>, %arg4: memref<368x384xbf16, #tpu.memory_space<vmem>>, %arg5: memref<4x17x32xf32, #tpu.memory_space<vmem>>) attributes {dimension_semantics = [#tpu.dimension_semantics<parallel>], iteration_bounds = array<i64: 2>, scalar_prefetch = 0 : i64, scratch_operands = 0 : i64, tpu.core_type = #tpu.core_type<tc>, window_params = [{transform_indices = @transform_0, window_bounds = array<i64: 4, 16, 128>}, {transform_indices = @transform_1, window_bounds = array<i64: 4, 8, 128>}, {transform_indices = @transform_2, window_bounds = array<i64: 4, 16, 4>}, {pipeline_mode = #tpu.pipeline_mode<synchronous>, transform_indices = @transform_3, window_bounds = array<i64: 368, 384>}, {transform_indices = @transform_4, window_bounds = array<i64: 4, 17, 32>}]} {
    %c0 = arith.constant 0 : index
    %c0_0 = arith.constant 0 : index
    %c0_1 = arith.constant 0 : index
    %0 = vector.load %arg1[%c0, %c0_0, %c0_1] : memref<4x16x128xf32, #tpu.memory_space<vmem>>, vector<4x16x128xf32>
    %1 = vector.shape_cast %0 : vector<4x16x128xf32> to vector<64x128xf32>
    %2 = arith.truncf %1 : vector<64x128xf32> to vector<64x128xbf16>
    %3 = vector.extract_strided_slice %1 {offsets = [0, 32], sizes = [64, 32], strides = [1, 1]} : vector<64x128xf32> to vector<64x32xf32>
    %c0_2 = arith.constant 0 : index
    %c0_3 = arith.constant 0 : index
    %c0_4 = arith.constant 0 : index
    %4 = vector.load %arg3[%c0_2, %c0_3, %c0_4] : memref<4x16x4xf32, #tpu.memory_space<vmem>>, vector<4x16x4xf32>
    %5 = vector.extract_strided_slice %4 {offsets = [0, 0, 0], sizes = [4, 16, 1], strides = [1, 1, 1]} : vector<4x16x4xf32> to vector<4x16x1xf32>
    %cst = arith.constant 0.000000e+00 : f32
    %6 = vector.broadcast %cst : f32 to vector<4x16x1xf32>
    %7 = arith.cmpf ogt, %5, %6 : vector<4x16x1xf32>
    %8 = vector.extract_strided_slice %4 {offsets = [0, 0, 1], sizes = [4, 16, 1], strides = [1, 1, 1]} : vector<4x16x4xf32> to vector<4x16x1xf32>
    %cst_5 = arith.constant 0.000000e+00 : f32
    %9 = vector.broadcast %cst_5 : f32 to vector<4x16x1xf32>
    %10 = arith.cmpf ogt, %8, %9 : vector<4x16x1xf32>
    %11 = vector.extract_strided_slice %4 {offsets = [0, 0, 2], sizes = [4, 16, 1], strides = [1, 1, 1]} : vector<4x16x4xf32> to vector<4x16x1xf32>
    %cst_6 = arith.constant 0.000000e+00 : f32
    %12 = vector.broadcast %cst_6 : f32 to vector<4x16x1xf32>
    %13 = arith.cmpf ogt, %11, %12 : vector<4x16x1xf32>
    %14 = vector.extract_strided_slice %4 {offsets = [0, 0, 3], sizes = [4, 16, 1], strides = [1, 1, 1]} : vector<4x16x4xf32> to vector<4x16x1xf32>
    %cst_7 = arith.constant 0.000000e+00 : f32
    %15 = vector.broadcast %cst_7 : f32 to vector<4x16x1xf32>
    %16 = arith.cmpf ogt, %14, %15 : vector<4x16x1xf32>
    %c0_8 = arith.constant 0 : index
    %c0_9 = arith.constant 0 : index
    %c0_10 = arith.constant 0 : index
    %17 = vector.load %arg2[%c0_8, %c0_9, %c0_10] : memref<4x8x128xf32, #tpu.memory_space<vmem>>, vector<4x8x128xf32>
    %18 = vector.extract_strided_slice %17 {offsets = [0, 1, 0], sizes = [4, 1, 16], strides = [1, 1, 1]} : vector<4x8x128xf32> to vector<4x1x16xf32>
    %cst_11 = arith.constant 0.000000e+00 : f32
    %19 = vector.broadcast %cst_11 : f32 to vector<4x1x16xf32>
    %20 = arith.cmpf ogt, %18, %19 : vector<4x1x16xf32>
    %c0_12 = arith.constant 0 : index
    %c0_13 = arith.constant 0 : index
    %21 = vector.load %arg4[%c0_12, %c0_13] : memref<368x384xbf16, #tpu.memory_space<vmem>>, vector<128x384xbf16>
    %c128 = arith.constant 128 : index
    %c0_14 = arith.constant 0 : index
    %22 = vector.load %arg4[%c128, %c0_14] : memref<368x384xbf16, #tpu.memory_space<vmem>>, vector<32x128xbf16>
    %c160 = arith.constant 160 : index
    %c0_15 = arith.constant 0 : index
    %23 = vector.load %arg4[%c160, %c0_15] : memref<368x384xbf16, #tpu.memory_space<vmem>>, vector<64x128xbf16>
    %c224 = arith.constant 224 : index
    %c0_16 = arith.constant 0 : index
    %24 = vector.load %arg4[%c224, %c0_16] : memref<368x384xbf16, #tpu.memory_space<vmem>>, vector<64x128xbf16>
    %c288 = arith.constant 288 : index
    %c0_17 = arith.constant 0 : index
    %25 = vector.load %arg4[%c288, %c0_17] : memref<368x384xbf16, #tpu.memory_space<vmem>>, vector<64x128xbf16>
    %c352 = arith.constant 352 : index
    %c0_18 = arith.constant 0 : index
    %26 = vector.load %arg4[%c352, %c0_18] : memref<368x384xbf16, #tpu.memory_space<vmem>>, vector<8x384xbf16>
    %27 = arith.extf %26 : vector<8x384xbf16> to vector<8x384xf32>
    %28 = vector.extract_strided_slice %27 {offsets = [0, 0], sizes = [1, 384], strides = [1, 1]} : vector<8x384xf32> to vector<1x384xf32>
    %29 = vector.extract_strided_slice %27 {offsets = [1, 0], sizes = [1, 128], strides = [1, 1]} : vector<8x384xf32> to vector<1x128xf32>
    %30 = vector.extract_strided_slice %27 {offsets = [2, 0], sizes = [1, 64], strides = [1, 1]} : vector<8x384xf32> to vector<1x64xf32>
    %31 = vector.extract_strided_slice %27 {offsets = [3, 0], sizes = [1, 32], strides = [1, 1]} : vector<8x384xf32> to vector<1x32xf32>
    %32 = vector.extract_strided_slice %27 {offsets = [4, 0], sizes = [1, 32], strides = [1, 1]} : vector<8x384xf32> to vector<1x32xf32>
    %33 = vector.extract_strided_slice %27 {offsets = [5, 0], sizes = [1, 32], strides = [1, 1]} : vector<8x384xf32> to vector<1x32xf32>
    %cst_19 = arith.constant dense<0.000000e+00> : vector<64x384xf32>
    %34 = tpu.matmul %2, %21, %cst_19 {dimension_numbers = #tpu.dot_dimension_numbers<[1], [0], [0], [1], [0, 0, 1, 1], [], []>} : vector<64x128xbf16>, vector<128x384xbf16>, vector<64x384xf32> -> vector<64x384xf32>
    %35 = vector.broadcast %28 : vector<1x384xf32> to vector<64x384xf32>
    %36 = arith.addf %34, %35 : vector<64x384xf32>
    %37 = vector.extract_strided_slice %36 {offsets = [0, 0], sizes = [64, 32], strides = [1, 1]} : vector<64x384xf32> to vector<64x32xf32>
    %38 = arith.negf %37 : vector<64x32xf32>
    %39 = math.exp %38 : vector<64x32xf32>
    %cst_20 = arith.constant 1.000000e+00 : f32
    %40 = vector.broadcast %cst_20 : f32 to vector<64x32xf32>
    %41 = arith.addf %40, %39 : vector<64x32xf32>
    %42 = arith.divf %40, %41 : vector<64x32xf32>
    %43 = vector.extract_strided_slice %36 {offsets = [0, 32], sizes = [64, 32], strides = [1, 1]} : vector<64x384xf32> to vector<64x32xf32>
    %44 = arith.negf %43 : vector<64x32xf32>
    %45 = math.exp %44 : vector<64x32xf32>
    %cst_21 = arith.constant 1.000000e+00 : f32
    %46 = vector.broadcast %cst_21 : f32 to vector<64x32xf32>
    %47 = arith.addf %46, %45 : vector<64x32xf32>
    %48 = arith.divf %46, %47 : vector<64x32xf32>
    %49 = vector.extract_strided_slice %36 {offsets = [0, 64], sizes = [64, 32], strides = [1, 1]} : vector<64x384xf32> to vector<64x32xf32>
    %50 = vector.extract_strided_slice %36 {offsets = [0, 96], sizes = [64, 32], strides = [1, 1]} : vector<64x384xf32> to vector<64x32xf32>
    %51 = arith.mulf %42, %50 : vector<64x32xf32>
    %52 = arith.addf %49, %51 : vector<64x32xf32>
    %53 = math.tanh %52 : vector<64x32xf32>
    %cst_22 = arith.constant 1.000000e+00 : f32
    %54 = vector.broadcast %cst_22 : f32 to vector<64x32xf32>
    %55 = arith.subf %54, %48 : vector<64x32xf32>
    %56 = arith.mulf %55, %53 : vector<64x32xf32>
    %57 = arith.mulf %48, %3 : vector<64x32xf32>
    %58 = arith.addf %56, %57 : vector<64x32xf32>
    %59 = vector.shape_cast %58 : vector<64x32xf32> to vector<4x16x32xf32>
    %60 = vector.extract_strided_slice %36 {offsets = [0, 160], sizes = [64, 32], strides = [1, 1]} : vector<64x384xf32> to vector<64x32xf32>
    %61 = vector.shape_cast %60 : vector<64x32xf32> to vector<4x16x32xf32>
    %62 = vector.extract_strided_slice %36 {offsets = [0, 224], sizes = [64, 32], strides = [1, 1]} : vector<64x384xf32> to vector<64x32xf32>
    %63 = vector.shape_cast %62 : vector<64x32xf32> to vector<4x16x32xf32>
    %64 = vector.extract_strided_slice %36 {offsets = [0, 192], sizes = [64, 32], strides = [1, 1]} : vector<64x384xf32> to vector<64x32xf32>
    %65 = vector.shape_cast %64 : vector<64x32xf32> to vector<4x16x32xf32>
    %66 = vector.extract_strided_slice %36 {offsets = [0, 256], sizes = [64, 32], strides = [1, 1]} : vector<64x384xf32> to vector<64x32xf32>
    %67 = vector.shape_cast %66 : vector<64x32xf32> to vector<4x16x32xf32>
    %68 = vector.shape_cast %10 : vector<4x16x1xi1> to vector<4x16x1xi1>
    %69 = vector.broadcast %68 : vector<4x16x1xi1> to vector<4x16x32xi1>
    %70 = arith.select %69, %61, %63 : vector<4x16x32xi1>, vector<4x16x32xf32>
    %71 = arith.truncf %70 : vector<4x16x32xf32> to vector<4x16x32xbf16>
    %72 = vector.shape_cast %10 : vector<4x16x1xi1> to vector<4x16x1xi1>
    %73 = vector.broadcast %72 : vector<4x16x1xi1> to vector<4x16x32xi1>
    %74 = arith.select %73, %65, %67 : vector<4x16x32xi1>, vector<4x16x32xf32>
    %75 = arith.truncf %74 : vector<4x16x32xf32> to vector<4x16x32xbf16>
    %76 = vector.extract_strided_slice %36 {offsets = [0, 128], sizes = [64, 32], strides = [1, 1]} : vector<64x384xf32> to vector<64x32xf32>
    %77 = vector.shape_cast %76 : vector<64x32xf32> to vector<4x16x32xf32>
    %78 = arith.truncf %77 : vector<4x16x32xf32> to vector<4x16x32xbf16>
    "tpu.trace_start"() <{level = 10 : i32, message = "sqt,skt->sqk"}> : () -> ()
    %cst_23 = arith.constant dense<0.000000e+00> : vector<4x16x16xf32>
    %79 = tpu.matmul %71, %75, %cst_23 {dimension_numbers = #tpu.dot_dimension_numbers<[2], [2], [1], [1], [0, 0, 0, 1, 1, 1], [0], [0]>} : vector<4x16x32xbf16>, vector<4x16x32xbf16>, vector<4x16x16xf32> -> vector<4x16x16xf32>
    %cst_24 = arith.constant -1.000000e+09 : f32
    "tpu.trace_stop"() : () -> ()
    %80 = vector.shape_cast %20 : vector<4x1x16xi1> to vector<4x1x16xi1>
    %81 = vector.broadcast %80 : vector<4x1x16xi1> to vector<4x16x16xi1>
    %82 = vector.broadcast %cst_24 : f32 to vector<4x16x16xf32>
    %83 = arith.select %81, %79, %82 : vector<4x16x16xi1>, vector<4x16x16xf32>
    %cst_25 = arith.constant dense<0xFF800000> : vector<4x16xf32>
    %84 = vector.multi_reduction <maximumf>, %83, %cst_25 [2] : vector<4x16x16xf32> to vector<4x16xf32>
    %85 = vector.shape_cast %84 : vector<4x16xf32> to vector<4x16x1xf32>
    %86 = vector.broadcast %85 : vector<4x16x1xf32> to vector<4x16x16xf32>
    %87 = arith.subf %83, %86 : vector<4x16x16xf32>
    %88 = math.exp %87 : vector<4x16x16xf32>
    %cst_26 = arith.constant dense<0.000000e+00> : vector<4x16xf32>
    %89 = vector.multi_reduction <add>, %88, %cst_26 [2] : vector<4x16x16xf32> to vector<4x16xf32>
    %90 = vector.shape_cast %89 : vector<4x16xf32> to vector<4x16x1xf32>
    %91 = tpu.reciprocal %90 {approx = true} : vector<4x16x1xf32> -> vector<4x16x1xf32>
    %92 = vector.broadcast %91 : vector<4x16x1xf32> to vector<4x16x16xf32>
    %93 = arith.mulf %88, %92 : vector<4x16x16xf32>
    %94 = arith.truncf %93 : vector<4x16x16xf32> to vector<4x16x16xbf16>
    "tpu.trace_start"() <{level = 10 : i32, message = "sqk,skd->sqd"}> : () -> ()
    %cst_27 = arith.constant dense<0.000000e+00> : vector<4x16x32xf32>
    %95 = tpu.matmul %94, %78, %cst_27 {dimension_numbers = #tpu.dot_dimension_numbers<[2], [1], [1], [2], [0, 0, 0, 1, 1, 2], [0], [0]>} : vector<4x16x16xbf16>, vector<4x16x32xbf16>, vector<4x16x32xf32> -> vector<4x16x32xf32>
    "tpu.trace_stop"() : () -> ()
    %96 = math.tanh %95 : vector<4x16x32xf32>
    %cst_28 = arith.constant 0.000000e+00 : f32
    %97 = vector.shape_cast %7 : vector<4x16x1xi1> to vector<4x16x1xi1>
    %98 = vector.broadcast %97 : vector<4x16x1xi1> to vector<4x16x32xi1>
    %99 = vector.broadcast %cst_28 : f32 to vector<4x16x32xf32>
    %100 = arith.select %98, %59, %99 : vector<4x16x32xi1>, vector<4x16x32xf32>
    %101 = vector.shape_cast %13 : vector<4x16x1xi1> to vector<4x16x1xi1>
    %102 = vector.broadcast %101 : vector<4x16x1xi1> to vector<4x16x32xi1>
    %103 = arith.select %102, %96, %100 : vector<4x16x32xi1>, vector<4x16x32xf32>
    %c0_29 = arith.constant 0 : index
    %c0_30 = arith.constant 0 : index
    %c0_31 = arith.constant 0 : index
    %104 = vector.load %arg5[%c0_29, %c0_30, %c0_31] : memref<4x17x32xf32, #tpu.memory_space<vmem>>, vector<4x16x32xf32>
    tpu.vector_store %arg5[%c0_29, %c0_30, %c0_31], %103 {strides = array<i32>} : memref<4x17x32xf32, #tpu.memory_space<vmem>>, vector<4x16x32xf32>,
    %105 = vector.shape_cast %103 : vector<4x16x32xf32> to vector<64x32xf32>
    %106 = arith.truncf %105 : vector<64x32xf32> to vector<64x32xbf16>
    %cst_32 = arith.constant dense<0.000000e+00> : vector<64x128xf32>
    %107 = tpu.matmul %106, %22, %cst_32 {dimension_numbers = #tpu.dot_dimension_numbers<[1], [0], [0], [1], [0, 0, 1, 1], [], []>} : vector<64x32xbf16>, vector<32x128xbf16>, vector<64x128xf32> -> vector<64x128xf32>
    %108 = vector.broadcast %29 : vector<1x128xf32> to vector<64x128xf32>
    %109 = arith.addf %107, %108 : vector<64x128xf32>
    %110 = vector.extract_strided_slice %109 {offsets = [0, 0], sizes = [64, 64], strides = [1, 1]} : vector<64x128xf32> to vector<64x64xf32>
    %111 = vector.extract_strided_slice %109 {offsets = [0, 64], sizes = [64, 64], strides = [1, 1]} : vector<64x128xf32> to vector<64x64xf32>
    %112 = vector.shape_cast %111 : vector<64x64xf32> to vector<4x16x64xf32>
    %113 = vector.extract_strided_slice %17 {offsets = [0, 0, 0], sizes = [4, 1, 64], strides = [1, 1, 1]} : vector<4x8x128xf32> to vector<4x1x64xf32>
    %114 = vector.shape_cast %113 : vector<4x1x64xf32> to vector<4x1x64xf32>
    %115 = vector.broadcast %114 : vector<4x1x64xf32> to vector<4x16x64xf32>
    %116 = vector.shape_cast %115 : vector<4x16x64xf32> to vector<64x64xf32>
    %117 = arith.truncf %116 : vector<64x64xf32> to vector<64x64xbf16>
    %cst_33 = arith.constant dense<0.000000e+00> : vector<64x128xf32>
    %118 = tpu.matmul %117, %23, %cst_33 {dimension_numbers = #tpu.dot_dimension_numbers<[1], [0], [0], [1], [0, 0, 1, 1], [], []>} : vector<64x64xbf16>, vector<64x128xbf16>, vector<64x128xf32> -> vector<64x128xf32>
    %119 = vector.extract_strided_slice %118 {offsets = [0, 0], sizes = [64, 64], strides = [1, 1]} : vector<64x128xf32> to vector<64x64xf32>
    %120 = vector.broadcast %30 : vector<1x64xf32> to vector<64x64xf32>
    %121 = arith.addf %119, %120 : vector<64x64xf32>
    %122 = arith.mulf %121, %110 : vector<64x64xf32>
    %123 = arith.truncf %122 : vector<64x64xf32> to vector<64x64xbf16>
    %cst_34 = arith.constant dense<0.000000e+00> : vector<64x128xf32>
    %124 = tpu.matmul %123, %25, %cst_34 {dimension_numbers = #tpu.dot_dimension_numbers<[1], [0], [0], [1], [0, 0, 1, 1], [], []>} : vector<64x64xbf16>, vector<64x128xbf16>, vector<64x128xf32> -> vector<64x128xf32>
    %125 = vector.extract_strided_slice %124 {offsets = [0, 0], sizes = [64, 64], strides = [1, 1]} : vector<64x128xf32> to vector<64x64xf32>
    %126 = vector.shape_cast %125 : vector<64x64xf32> to vector<4x16x64xf32>
    %cst_35 = arith.constant -1.000000e+09 : f32
    %127 = vector.shape_cast %16 : vector<4x16x1xi1> to vector<4x16x1xi1>
    %128 = vector.broadcast %127 : vector<4x16x1xi1> to vector<4x16x64xi1>
    %129 = vector.broadcast %cst_35 : f32 to vector<4x16x64xf32>
    %130 = arith.select %128, %126, %129 : vector<4x16x64xi1>, vector<4x16x64xf32>
    %cst_36 = arith.constant dense<0xFF800000> : vector<4x64xf32>
    %131 = vector.multi_reduction <maximumf>, %130, %cst_36 [1] : vector<4x16x64xf32> to vector<4x64xf32>
    %132 = vector.shape_cast %131 : vector<4x64xf32> to vector<4x1x64xf32>
    %133 = vector.broadcast %132 : vector<4x1x64xf32> to vector<4x16x64xf32>
    %134 = arith.subf %130, %133 : vector<4x16x64xf32>
    %135 = math.exp %134 : vector<4x16x64xf32>
    %cst_37 = arith.constant dense<0.000000e+00> : vector<4x64xf32>
    %136 = vector.multi_reduction <add>, %135, %cst_37 [1] : vector<4x16x64xf32> to vector<4x64xf32>
    %137 = vector.shape_cast %136 : vector<4x64xf32> to vector<4x1x64xf32>
    %138 = tpu.reciprocal %137 {approx = true} : vector<4x1x64xf32> -> vector<4x1x64xf32>
    %139 = vector.broadcast %138 : vector<4x1x64xf32> to vector<4x16x64xf32>
    %140 = arith.mulf %135, %139 : vector<4x16x64xf32>
    %141 = arith.mulf %140, %112 : vector<4x16x64xf32>
    %142 = vector.shape_cast %141 : vector<4x16x64xf32> to vector<64x64xf32>
    %143 = arith.truncf %142 : vector<64x64xf32> to vector<64x64xbf16>
    %cst_38 = arith.constant dense<0.000000e+00> : vector<64x128xf32>
    %144 = tpu.matmul %143, %24, %cst_38 {dimension_numbers = #tpu.dot_dimension_numbers<[1], [0], [0], [1], [0, 0, 1, 1], [], []>} : vector<64x64xbf16>, vector<64x128xbf16>, vector<64x128xf32> -> vector<64x128xf32>
    %145 = vector.extract_strided_slice %144 {offsets = [0, 0], sizes = [64, 32], strides = [1, 1]} : vector<64x128xf32> to vector<64x32xf32>
    %146 = vector.shape_cast %145 : vector<64x32xf32> to vector<4x16x32xf32>
    %cst_39 = arith.constant dense<0.000000e+00> : vector<4x32xf32>
    %147 = vector.multi_reduction <add>, %146, %cst_39 [1] : vector<4x16x32xf32> to vector<4x32xf32>
    %148 = vector.shape_cast %147 : vector<4x32xf32> to vector<4x1x32xf32>
    %149 = vector.shape_cast %31 : vector<1x32xf32> to vector<1x1x32xf32>
    %150 = vector.broadcast %149 : vector<1x1x32xf32> to vector<4x1x32xf32>
    %151 = arith.addf %148, %150 : vector<4x1x32xf32>
    %cst_40 = arith.constant dense<0.000000e+00> : vector<4x1xf32>
    %152 = vector.multi_reduction <add>, %151, %cst_40 [2] : vector<4x1x32xf32> to vector<4x1xf32>
    %153 = vector.shape_cast %152 : vector<4x1xf32> to vector<4x1x1xf32>
    %cst_41 = arith.constant 3.200000e+01 : f32
    %154 = vector.broadcast %cst_41 : f32 to vector<4x1x1xf32>
    %155 = arith.divf %153, %154 : vector<4x1x1xf32>
    %156 = vector.broadcast %155 : vector<4x1x1xf32> to vector<4x1x32xf32>
    %157 = arith.subf %151, %156 : vector<4x1x32xf32>
    %158 = arith.mulf %157, %157 : vector<4x1x32xf32>
    %cst_42 = arith.constant dense<0.000000e+00> : vector<4x1xf32>
    %159 = vector.multi_reduction <add>, %158, %cst_42 [2] : vector<4x1x32xf32> to vector<4x1xf32>
    %160 = vector.shape_cast %159 : vector<4x1xf32> to vector<4x1x1xf32>
    %cst_43 = arith.constant 3.200000e+01 : f32
    %161 = vector.broadcast %cst_43 : f32 to vector<4x1x1xf32>
    %162 = arith.divf %160, %161 : vector<4x1x1xf32>
    %cst_44 = arith.constant 9.99999974E-6 : f32
    %163 = vector.broadcast %cst_44 : f32 to vector<4x1x1xf32>
    %164 = arith.addf %162, %163 : vector<4x1x1xf32>
    %165 = math.rsqrt %164 : vector<4x1x1xf32>
    %166 = vector.broadcast %165 : vector<4x1x1xf32> to vector<4x1x32xf32>
    %167 = arith.mulf %157, %166 : vector<4x1x32xf32>
    %168 = vector.shape_cast %32 : vector<1x32xf32> to vector<1x1x32xf32>
    %169 = vector.broadcast %168 : vector<1x1x32xf32> to vector<4x1x32xf32>
    %170 = arith.mulf %167, %169 : vector<4x1x32xf32>
    %171 = vector.shape_cast %33 : vector<1x32xf32> to vector<1x1x32xf32>
    %172 = vector.broadcast %171 : vector<1x1x32xf32> to vector<4x1x32xf32>
    %173 = arith.addf %170, %172 : vector<4x1x32xf32>
    %cst_45 = arith.constant 0.000000e+00 : f32
    %174 = vector.broadcast %cst_45 : f32 to vector<4x1x32xf32>
    %175 = arith.cmpf ogt, %173, %174 : vector<4x1x32xf32>
    %cst_46 = arith.constant 0.00999999977 : f32
    %176 = vector.broadcast %cst_46 : f32 to vector<4x1x32xf32>
    %177 = arith.mulf %176, %173 : vector<4x1x32xf32>
    %178 = arith.select %175, %173, %177 : vector<4x1x32xi1>, vector<4x1x32xf32>
    %c0_47 = arith.constant 0 : index
    %c16 = arith.constant 16 : index
    %c0_48 = arith.constant 0 : index
    %179 = vector.load %arg5[%c0_47, %c16, %c0_48] : memref<4x17x32xf32, #tpu.memory_space<vmem>>, vector<4x1x32xf32>
    tpu.vector_store %arg5[%c0_47, %c16, %c0_48], %178 {strides = array<i32>} : memref<4x17x32xf32, #tpu.memory_space<vmem>>, vector<4x1x32xf32>,
    return
  }
  func.func @transform_0(%arg0: i32) -> (i32, i32, i32) {
    %c0_i32 = arith.constant 0 : i32
    %c0_i32_0 = arith.constant 0 : i32
    %c0_i32_1 = arith.constant 0 : i32
    return %arg0, %c0_i32, %c0_i32_0 : i32, i32, i32
  }
  func.func @transform_1(%arg0: i32) -> (i32, i32, i32) {
    %c0_i32 = arith.constant 0 : i32
    %c0_i32_0 = arith.constant 0 : i32
    %c0_i32_1 = arith.constant 0 : i32
    return %arg0, %c0_i32, %c0_i32_0 : i32, i32, i32
  }
  func.func @transform_2(%arg0: i32) -> (i32, i32, i32) {
    %c0_i32 = arith.constant 0 : i32
    %c0_i32_0 = arith.constant 0 : i32
    %c0_i32_1 = arith.constant 0 : i32
    return %arg0, %c0_i32, %c0_i32_0 : i32, i32, i32
  }
  func.func @transform_3(%arg0: i32) -> (i32, i32) {
    %c0_i32 = arith.constant 0 : i32
    %c0_i32_0 = arith.constant 0 : i32
    %c0_i32_1 = arith.constant 0 : i32
    return %c0_i32, %c0_i32_0 : i32, i32
  }
  func.func @transform_4(%arg0: i32) -> (i32, i32, i32) {
    %c0_i32 = arith.constant 0 : i32
    %c0_i32_0 = arith.constant 0 : i32
    %c0_i32_1 = arith.constant 0 : i32
    return %arg0, %c0_i32, %c0_i32_0 : i32, i32, i32
  }
}

</mosaic_0001>

<bundles_post_ra>
// kernel: forward_batched.1
= control target key start
LH: loop header
LB: loop body
LE: loop exit
PB: predicated region body
PF: predicated region fallthrough
CT: control target
= control target key end

     0   :  { %s3018_s15 = smov 0   ;;  %s3732_s0 = inlined_call_operand.vmem [shape: f32[8,16,128], index: 0, kind: input, shape index: {}]   ;;  %s3733_s1 = inlined_call_operand.vmem [shape: f32[8,8,128], index: 1, kind: input, shape index: {}]   ;;  %s3734_s2 = inlined_call_operand.vmem [shape: f32[8,16,4], index: 2, kind: input, shape index: {}]   ;;  %s3735_s3 = inlined_call_operand.vmem [shape: bf16[368,384], index: 3, kind: input, shape index: {}]   ;;  %s3736_s4 = inlined_call_operand.vmem [shape: f32[8,17,32], index: 4, kind: output, shape index: {}]  }
   0x1 LB: > { %s2449_s16 = sadd.s32 4294967295, %s2982_s15   ;;  %p2453_p0 = scmp.ge.s32.totalorder %s2982_s15, 1  ;;  %s2982_s15 = sphi %s3018_s15, %s14_s15  }
   0x2   : > { %p187_p1 = scmp.lt.s32.totalorder %s2982_s15, 3 }
   0x4   : > { %p188_p2 = pnand %p2453_p0, %p187_p1 }
   0x5   : > { %v2794_v0 = vld [vmem:[%s3735_s3 + $0x4] ss:$12 sps:$4 sm:$0xff] (!%p188_p2)   ;;  %s2454_s19 = sshll.u32 (!%p188_p2), %s2449_s16, 2  ;;  %v2796_v1 = vld [vmem:[%s3735_s3 + $0x8] ss:$12 sps:$4 sm:$0xff] (!%p188_p2)   ;;  %v2984_v2 = vmov (!%p188_p2), 0   ;;  %v355_v52 = vlaneseq (!%p188_p2) }
   0x6   : > { %191 = sbr.rel (%p188_p2) target bundleno = 2506 (0x9ca), region = 36  ;;  %527 = vmatprep.mubr.bf16.mxu0 (!%p188_p2), %v2984_v2  ;;  %495 = vmatprep.subr.bf16.mxu0 (!%p188_p2), %v2794_v0  ;;  %v2797_v3 = vld [vmem:[%s3735_s3] ss:$12 sps:$4 sm:$0xff] (!%p188_p2)   ;;  %p227_p3 = scmp.lt.s32.totalorder (!%p188_p2), %s2454_s19, 7  ;;  %v2798_v4 = vld [vmem:[%s3735_s3 + $0x1c] ss:$12 sps:$4 sm:$0xff] (!%p188_p2)  }
   0x7   : > { %2596 = vmatprep.subr.bf16.mxu1 (!%p188_p2), %v2796_v1  ;;  %v2985_v5 = vmov (!%p188_p2), 1   ;;  %496 = vmatpush1.bf16.msra.mxu0 (!%p188_p2), %v2797_v3  ;;  %v2800_v6 = vld [vmem:[%s3735_s3 + $0x20] ss:$12 sps:$4 sm:$0xff] (!%p188_p2)   ;;  %v2801_v7 = vld [vmem:[%s3735_s3 + $0x18] ss:$12 sps:$4 sm:$0xff] (!%p188_p2)   ;;  %v3164_v53 = vld [vmem:[%s3735_s3 + $0x210] sm:$0xff] (!%p188_p2) }
   0x8   : > { %2747 = vset.pattern.permute.xlu1 (!%p188_p2), %v2985_v5  ;;  %2597 = vmatpush3.bf16.msra.mxu1 (!%p188_p2), %v2796_v1  ;;  %v2802_v8 = vld [vmem:[%s3735_s3 + $0x34] ss:$12 sps:$4 sm:$0xff] (!%p188_p2)   ;;  %v2804_v9 = vld [vmem:[%s3735_s3 + $0x38] ss:$12 sps:$4 sm:$0xff] (!%p188_p2)   ;;  %v2805_v10 = vld [vmem:[%s3735_s3 + $0x30] ss:$12 sps:$4 sm:$0xff] (!%p188_p2)   ;;  %v353_v56 = vunpack.c.h.bf16 (!%p188_p2), %v3164_v53 }
   0x9   : > { %497 = vmatprep.subr.bf16.mxu0 (!%p188_p2), %v2798_v4  ;;  %2746 = vset.pattern.permute.xlu0 (!%p188_p2), %v2985_v5  ;;  %v2806_v11 = vld [vmem:[%s3735_s3 + $0x4c] ss:$12 sps:$4 sm:$0xff] (!%p188_p2)   ;;  %v2808_v12 = vld [vmem:[%s3735_s3 + $0x50] ss:$12 sps:$4 sm:$0xff] (!%p188_p2)   ;;  %v2809_v13 = vld [vmem:[%s3735_s3 + $0x48] ss:$12 sps:$4 sm:$0xff] (!%p188_p2)  }
   0xa   : > { %2598 = vmatprep.subr.bf16.mxu1 (!%p188_p2), %v2800_v6  ;;  %v2810_v14 = vld [vmem:[%s3735_s3 + $0x64] ss:$12 sps:$4 sm:$0xff] (!%p188_p2)   ;;  %v2812_v15 = vld [vmem:[%s3735_s3 + $0x68] ss:$12 sps:$4 sm:$0xff] (!%p188_p2)   ;;  %v2813_v16 = vld [vmem:[%s3735_s3 + $0x60] ss:$12 sps:$4 sm:$0xff] (!%p188_p2)  }
   0xb   : > { %498 = vmatpush1.bf16.msra.mxu0 (!%p188_p2), %v2801_v7  ;;  %v2814_v17 = vld [vmem:[%s3735_s3 + $0x7c] ss:$12 sps:$4 sm:$0xff] (!%p188_p2)   ;;  %v2816_v18 = vld [vmem:[%s3735_s3 + $0x80] ss:$12 sps:$4 sm:$0xff] (!%p188_p2)   ;;  %v2817_v21 = vld [vmem:[%s3735_s3 + $0x78] ss:$12 sps:$4 sm:$0xff] (!%p188_p2)  }
   0xc   : > { %2599 = vmatpush3.bf16.msra.mxu1 (!%p188_p2), %v2800_v6  ;;  %499 = vmatprep.subr.bf16.mxu0 (!%p188_p2), %v2802_v8  ;;  %v2818_v22 = vld [vmem:[%s3735_s3 + $0x94] ss:$12 sps:$4 sm:$0xff] (!%p188_p2)   ;;  %v2820_v24 = vld [vmem:[%s3735_s3 + $0x98] ss:$12 sps:$4 sm:$0xff] (!%p188_p2)   ;;  %v2821_v27 = vld [vmem:[%s3735_s3 + $0x90] ss:$12 sps:$4 sm:$0xff] (!%p188_p2)  }
   0xd   : > { %s3740_s19 = smov (!%p227_p3, %s2454_s19), 7  ;;  %2600 = vmatprep.subr.bf16.mxu1 %v2804_v9  ;;  %v2822_v31 = vld [vmem:[%s3735_s3 + $0xac] ss:$12 sps:$4 sm:$0xff]   ;;  %v2824_v35 = vld [vmem:[%s3735_s3 + $0xb0] ss:$12 sps:$4 sm:$0xff]   ;;  %v3166_v54 = vshrl.u32 %v355_v52, 7 }
   0xe   : > { %s2536_s17 = sshll.u32 %s3740_s19, 4  ;;  %v2825_v39 = vld [vmem:[%s3735_s3 + $0xa8] ss:$12 sps:$4 sm:$0xff]   ;;  %v351_v55 = vld [vmem:[%s3735_s3 + $0x218] sm:$0xf]  ;;  %s2986_s30 = smov 64  }
   0xf   : > { %500 = vmatpush1.bf16.msra.mxu0 %v2805_v10  ;;  %s3079_s27 = scalar_lea.vmem %s3732_s0, %s2536_s17  ;;  %s3090_s8 = scalar_lea.vmem %s3734_s2, %s2536_s17  ;;  %v3173_v57 = vsub.s32 0, %v3166_v54  ;;  %v354_v58 = vunpack.c.l.bf16 %v351_v55  ;;  %vm2988_vm8 = vmmov 0  }
  0x10   : > { %2601 = vmatpush3.bf16.msra.mxu1 %v2804_v9  ;;  %501 = vmatprep.subr.bf16.mxu0 %v2806_v11  ;;  %v254_v19 = vld [vmem:[%s3079_s27] sm:$0xff]  ;;  %v255_v20 = vld [vmem:[%s3079_s27 + $0x8] sm:$0xff]  ;;  %v268_v25 = vld [vmem:[%s3090_s8 + $0x10] sm:$0xff]  ;;  %s2989_s5 = smov 96   ;;  %s2458_s6 = sshll.u32 %s3740_s19, 3 }
  0x11   : > { %2602 = vmatprep.subr.bf16.mxu1 %v2808_v12  ;;  %v262_v23 = vpack.c.bf16 %v255_v20, %v254_v19  ;;  %v269_v26 = vld [vmem:[%s3090_s8 + $0x18] sm:$0xff]  ;;  %vm276_vm0 = vcmp.gt.f32.partialorder %v268_v25, 0.0  ;;  %v270_v28 = vld [vmem:[%s3090_s8 + $0x20] sm:$0xff]  ;;  %v272_v29 = vld [vmem:[%s3090_s8 + $0x30] sm:$0xff]  ;;  %v362_v59 = vrot.slane %v353_v56, %v3173_v57  ;;  %v366_v60 = vrot.slane %v354_v58, %v3173_v57  ;;  %s237_s9 = scalar_lea.vmem %s3733_s1, %s2458_s6  ;;  %s2990_s10 = smov 32  }
  0x12   : > { %vm277_vm1 = vcmp.gt.f32.partialorder %v269_v26, 0.0  ;;  %v266_v30 = vld [vmem:[%s3090_s8] sm:$0xff]  ;;  %v3115_v32 = vsel %vm276_vm0, 1, %v2984_v2  ;;  %vm278_vm2 = vcmp.gt.f32.partialorder %v270_v28, 0.0  ;;  %v267_v33 = vld [vmem:[%s3090_s8 + $0x8] sm:$0xff]  ;;  %vm280_vm5 = vcmp.gt.f32.partialorder %v272_v29, 0.0 }
  0x13   : > { %502 = vmatpush1.bf16.msra.mxu0 %v2809_v13  ;;  %2612 = vmatprep.mubr.bf16.mxu1 %v262_v23  ;;  %v271_v34 = vld [vmem:[%s3090_s8 + $0x28] sm:$0xff]  ;;  %v3123_v36 = vsel %vm277_vm1, 1, %v2984_v2  ;;  %vm274_vm3 = vcmp.gt.f32.partialorder %v266_v30, 0.0  ;;  %vm275_vm4 = vcmp.gt.f32.partialorder %v267_v33, 0.0  ;;  %v3126_v37 = vsel %vm278_vm2, 1, %v2984_v2  ;;  %v256_v40 = vld [vmem:[%s3079_s27 + $0x10] sm:$0xff] }
  0x14   : > { %2603 = vmatpush3.bf16.msra.mxu1 %v2808_v12  ;;  %503 = vmatprep.subr.bf16.mxu0 %v2810_v14  ;;  %v3129_v38 = vsel %vm274_vm3, 1, %v2984_v2  ;;  %vm279_vm6 = vcmp.gt.f32.partialorder %v271_v34, 0.0  ;;  %v257_v41 = vld [vmem:[%s3079_s27 + $0x18] sm:$0xff]  ;;  %v3139_v42 = vsel %vm275_vm4, 1, %v2984_v2  ;;  %v258_v44 = vld [vmem:[%s3079_s27 + $0x20] sm:$0xff]  ;;  %v259_v45 = vld [vmem:[%s3079_s27 + $0x28] sm:$0xff] }
  0x15   : > { %2604 = vmatprep.subr.bf16.mxu1 %v2812_v15  ;;  %848 = vperm.xlu1 %2747, %v3115_v32   ;;  %v3142_v43 = vsel %vm279_vm6, 1, %v2984_v2  ;;  %v263_v46 = vpack.c.bf16 %v257_v41, %v256_v40  ;;  %v264_v47 = vpack.c.bf16 %v259_v45, %v258_v44  ;;  %v3152_v48 = vsel %vm280_vm5, 1, %v2984_v2  ;;  %v260_v49 = vld [vmem:[%s3079_s27 + $0x30] sm:$0xff]  ;;  %v261_v50 = vld [vmem:[%s3079_s27 + $0x38] sm:$0xff] }
  0x16   : > { %842 = vperm.xlu0 %2746, %v3129_v38   ;;  %v265_v51 = vpack.c.bf16 %v261_v50, %v260_v49  ;;  %v273_v9 = vld [vmem:[%s3090_s8 + $0x38] sm:$0xff]  ;;  %vm971_vm1 = vcmask 261120   ;;  %vm1210_vm4 = vcmask 130048  }
  0x17   : > { %504 = vmatpush1.bf16.msra.mxu0 %v2813_v16  ;;  %vm281_vm7 = vcmp.gt.f32.partialorder %v273_v9, 0.0 }
  0x18   : > { %2605 = vmatpush3.bf16.msra.mxu1 %v2812_v15  ;;  %505 = vmatprep.subr.bf16.mxu0 %v2814_v17  ;;  %v3193_v20 = vsel %vm281_vm7, 1, %v2984_v2 }
  0x19   : > { %2606 = vmatprep.subr.bf16.mxu1 %v2816_v18  ;;  %851 = vperm.xlu1 %2747, %v3123_v36  }
  0x1a   : > { %845 = vperm.xlu0 %2746, %v3139_v42  }
  0x1b   : > { %506 = vmatpush1.bf16.msra.mxu0 %v2817_v21 }
  0x1c   : > { %2607 = vmatpush3.bf16.msra.mxu1 %v2816_v18  ;;  %507 = vmatprep.subr.bf16.mxu0 %v2818_v22 }
  0x1d   : > { %2608 = vmatprep.subr.bf16.mxu1 %v2820_v24  ;;  %854 = vperm.xlu1 %2747, %v3126_v37  }
  0x1e   : > { %857 = vperm.xlu0 %2746, %v3142_v43  }
  0x1f   : > { %508 = vmatpush1.bf16.msra.mxu0 %v2821_v27 }
  0x20   : > { %2609 = vmatpush3.bf16.msra.mxu1 %v2820_v24  ;;  %509 = vmatprep.subr.bf16.mxu0 %v2822_v31 }
  0x21   : > { %2610 = vmatprep.subr.bf16.mxu1 %v2824_v35  ;;  %860 = vperm.xlu1 %2747, %v3152_v48  }
  0x23   : > { %510 = vmatpush1.bf16.msra.mxu0 %v2825_v39 }
  0x24   : > { %2611 = vmatpush3.bf16.msra.mxu1 %v2824_v35 }
  0x25   : > { %2789 = vset.pattern.permute.xlu1 %v2984_v2 }
  0x26   : > { %528 = vmatmul.mubr.bf16.vlgmr.msra.gmra.mrb[0].mxu0 %v262_v23 }
  0x27   : > { %2613 = vmatmul.mubr.bf16.vlgmr.msra.gmra.mrb[0].mxu1 %v263_v46  ;;  %537 = vmatprep.mubr.bf16.mxu0 %v2984_v2 }
  0x28   : > { %2616 = vmatprep.mubr.bf16.mxu1 %v264_v47 }
  0x2e   : > { %538 = vmatmul.mubr.bf16.gmra.mrb[4].mxu0 %v263_v46 }
  0x2f   : > { %2617 = vmatmul.mubr.bf16.gmra.mrb[4].mxu1 %v265_v51  ;;  %547 = vmatprep.mubr.bf16.mxu0 %v2984_v2 }
  0x36   : > { %548 = vmatmul.mubr.bf16.gmra.mrb[8].mxu0 %v264_v47 }
  0x37   : > { %557 = vmatprep.mubr.bf16.mxu0 %v2984_v2 }
  0x3e   : > { %558 = vmatmul.mubr.bf16.gmra.mrb[12].mxu0 %v265_v51 }
  0x94   : > { %v3231_v58 = vpop.permute.xlu1 %848 }
  0x95   : > { %vm867_vm15 = vcmp.eq.s32.totalorder %v3231_v58, 1 }
  0xf9   : > { %v3177_v61 = vpop.f32.mrb[0].mxu0 }
  0xfa   : > { %v2614_v62 = vpop.f32.mrb[0].mxu1  ;;  %v531_v63 = vpop.f32.mrb[1].mxu0 }
  0xfb   : > { %v602_v0 = vpop.f32.mrb[1].mxu1  ;;  %v3179_v1 = vadd.f32 %v531_v63, %v362_v59  ;;  %v3181_v3 = vpop.f32.mrb[2].mxu0  ;;  %v611_v5 = vadd.f32 %v2614_v62, %v366_v60 }
  0xfc   : > { %v2615_v4 = vpop.f32.mrb[2].mxu1  ;;  %v535_v7 = vpop.f32.mrb[3].mxu0  ;;  %v603_v10 = vadd.f32 %v602_v0, %v366_v60 }
  0xfd   : > { %v614_v6 = vadd.f32 %v2615_v4, %v366_v60  ;;  %v605_v8 = vpop.f32.mrb[3].mxu1  ;;  %v3184_v11 = vadd.f32 %v535_v7, %v362_v59  ;;  %v843_v62 = vpop.permute.xlu0 %842  ;;  %v2987_v4 = vmov 0.0  }
  0xfe   : > { %v606_v12 = vadd.f32 %v605_v8, %v366_v60  ;;  %2620 = vmatprep.subr.bf16.mxu1 %v2987_v4  ;;  %2632 = vmatprep.subr.bf16.mxu0 %v2987_v4  ;;  %vm865_vm9 = vcmp.eq.s32.totalorder %v843_v62, 1 }
  0xff   : > { %v2753_v13 = vpack.i.bf16 %v614_v6, %v611_v5  ;;  %v2758_v15 = vpack.i.bf16 %v3184_v11, %v3179_v1  ;;  %2622 = vmatprep.mubr.msk.bf16.mxu1 %vm2988_vm8, %v2987_v4  ;;  %2634 = vmatprep.mubr.msk.bf16.mxu0 %vm2988_vm8, %v2987_v4 }
 0x100   : > { %v2748_v14 = vpack.i.bf16 %v606_v12, %v603_v10 }
 0x101   : > { %2759 = vrot.lane.b32.xlu1 %v2758_v15, %s2986_s30  ;;  %v3190_v17 = vpop.f32.mrb[4].mxu0  ;;  %v846_v0 = vpop.permute.xlu0 %845 }
 0x102   : > { %v2618_v16 = vpop.f32.mrb[4].mxu1  ;;  %2749 = vrot.lane.b32.xlu0 %v2748_v14, %s2986_s30  ;;  %v541_v21 = vpop.f32.mrb[5].mxu0  ;;  %vm866_vm10 = vcmp.eq.s32.totalorder %v846_v0, 1 }
 0x103   : > { %v627_v18 = vadd.f32 %v2618_v16, %v366_v60  ;;  %v618_v19 = vpop.f32.mrb[5].mxu1  ;;  %v3195_v24 = vpop.f32.mrb[6].mxu0  ;;  %v3198_v29 = vadd.f32 %v541_v21, %v362_v59 }
 0x104   : > { %v619_v22 = vadd.f32 %v618_v19, %v366_v60  ;;  %v2619_v23 = vpop.f32.mrb[6].mxu1  ;;  %v545_v27 = vpop.f32.mrb[7].mxu0 }
 0x105   : > { %v630_v25 = vadd.f32 %v2619_v23, %v366_v60  ;;  %v621_v26 = vpop.f32.mrb[7].mxu1  ;;  %v3200_v30 = vadd.f32 %v545_v27, %v362_v59  ;;  %v3239_v5 = vpop.permute.xlu0 %857 }
 0x106   : > { %v622_v28 = vadd.f32 %v621_v26, %v366_v60  ;;  %863 = vperm.xlu0 %2746, %v3193_v20   ;;  %v3233_v60 = vpop.permute.xlu1 %851  ;;  %vm870_vm12 = vcmp.eq.s32.totalorder %v3239_v5, 1 }
 0x107   : > { %v2773_v31 = vpack.i.bf16 %v630_v25, %v627_v18  ;;  %v2768_v35 = vpack.i.bf16 %v3200_v30, %v3198_v29  ;;  %vm868_vm0 = vcmp.eq.s32.totalorder %v3233_v60, 1 }
 0x108   : > { %v2763_v33 = vpack.i.bf16 %v622_v28, %v619_v22 }
 0x109   : > { %v3204_v34 = vpop.f32.mrb[8].mxu0 }
 0x10a   : > { %2754 = vrot.lane.b32.xlu0 %v2753_v13, %s2986_s30  ;;  %2764 = vrot.lane.b32.xlu1 %v2763_v33, %s2986_s30  ;;  %v551_v39 = vpop.f32.mrb[9].mxu0  ;;  %v3235_v63 = vpop.permute.xlu1 %854 }
 0x10b   : > { %2788 = vset.pattern.permute.xlu0 %v2984_v2  ;;  %v3209_v40 = vadd.f32 %v551_v39, %v362_v59  ;;  %v3211_v41 = vpop.f32.mrb[10].mxu0  ;;  %vm869_vm11 = vcmp.eq.s32.totalorder %v3235_v63, 1 }
 0x10c   : > { %v555_v44 = vpop.f32.mrb[11].mxu0 }
 0x10d   : > { %v3214_v45 = vadd.f32 %v555_v44, %v362_v59 }
 0x10e   : > { %2774 = vrot.lane.b32.xlu1 %v2773_v31, %s2986_s30  ;;  %2769 = vrot.lane.b32.xlu0 %v2768_v35, %s2986_s30 }
 0x10f   : > { %v2778_v46 = vpack.i.bf16 %v3214_v45, %v3209_v40 }
 0x111   : > { %v3219_v47 = vpop.f32.mrb[12].mxu0 }
 0x112   : > { %2779 = vrot.lane.b32.xlu0 %v2778_v46, %s2986_s30  ;;  %v561_v49 = vpop.f32.mrb[13].mxu0 }
 0x113   : > { %v3222_v50 = vadd.f32 %v561_v49, %v362_v59  ;;  %v3224_v51 = vpop.f32.mrb[14].mxu0 }
 0x114   : > { %v565_v52 = vpop.f32.mrb[15].mxu0 }
 0x115   : > { %v3226_v55 = vadd.f32 %v565_v52, %v362_v59  ;;  %v861_v59 = vpop.permute.xlu1 %860 }
 0x116   : > { %vm871_vm13 = vcmp.eq.s32.totalorder %v861_v59, 1 }
 0x117   : > { %v2783_v56 = vpack.i.bf16 %v3226_v55, %v3222_v50 }
 0x119   : > { %2784 = vrot.lane.b32.xlu1 %v2783_v56, %s2986_s30 }
 0x173   : > { %v2760_v7 = vpop.permute.xlu1 %2759 }
 0x174   : > { %v2750_v6 = vpop.permute.xlu0 %2749  ;;  %v2762_v10 = vunpack.i.h.bf16 %v2760_v7  ;;  %v2761_v12 = vunpack.i.l.bf16 %v2760_v7 }
 0x175   : > { %v2752_v8 = vunpack.i.h.bf16 %v2750_v6  ;;  %v2751_v9 = vunpack.i.l.bf16 %v2750_v6 }
 0x176   : > { %v905_v13 = vsel %vm865_vm9, %v3179_v1, %v2761_v12  ;;  %v906_v14 = vsel %vm866_vm10, %v3184_v11, %v2762_v10 }
 0x177   : > { %v949_v15 = vsel %vm865_vm9, %v3179_v1, %v2751_v9  ;;  %v950_v16 = vsel %vm866_vm10, %v3184_v11, %v2752_v8  ;;  %v913_v18 = vpack.c.bf16 %v906_v14, %v905_v13 }
 0x178   : > { %v957_v19 = vpack.c.bf16 %v950_v16, %v949_v15 }
 0x179   : > { %966 = vrot.lane.b32.xlu1 %v913_v18, %s2989_s5 }
 0x17a   : > { %969 = vrot.lane.b32.xlu0 %v957_v19, %s2986_s30 }
 0x17c   : > { %v2765_v21 = vpop.permute.xlu1 %2764 }
 0x17d   : > { %v2767_v22 = vunpack.i.h.bf16 %v2765_v21  ;;  %v2766_v23 = vunpack.i.l.bf16 %v2765_v21 }
 0x17f   : > { %v953_v25 = vsel %vm869_vm11, %v3209_v40, %v2766_v23  ;;  %v954_v26 = vsel %vm870_vm12, %v3214_v45, %v2767_v22 }
 0x180   : > { %v2775_v27 = vpop.permute.xlu1 %2774  ;;  %v959_v28 = vpack.c.bf16 %v954_v26, %v953_v25 }
 0x181   : > { %v2777_v31 = vunpack.i.h.bf16 %v2775_v27  ;;  %v2776_v33 = vunpack.i.l.bf16 %v2775_v27 }
 0x182   : > { %1076 = vrot.lane.b32.xlu1 %v959_v28, %s2986_s30 }
 0x183   : > { %v955_v44 = vsel %vm871_vm13, %v3222_v50, %v2776_v33 }
 0x185   : > { %v864_v35 = vpop.permute.xlu0 %863 }
 0x186   : > { %vm872_vm14 = vcmp.eq.s32.totalorder %v864_v35, 1 }
 0x187   : > { %v956_v39 = vsel %vm872_vm14, %v3226_v55, %v2777_v31 }
 0x188   : > { %v960_v46 = vpack.c.bf16 %v956_v39, %v955_v44 }
 0x189   : > { %v2755_v49 = vpop.permute.xlu0 %2754 }
 0x18a   : > { %v2757_v52 = vunpack.i.h.bf16 %v2755_v49  ;;  %v2756_v56 = vunpack.i.l.bf16 %v2755_v49  ;;  %1129 = vrot.lane.b32.xlu1 %v960_v46, %s2986_s30  ;;  %v961_v46 = vpack.c.bf16 %v3184_v11, %v3179_v1  ;;  %v962_v11 = vpack.c.bf16 %v3200_v30, %v3198_v29 }
 0x18b   : > { %v2785_v62 = vpop.permute.xlu1 %2784 }
 0x18c   : > { %v951_v0 = vsel %vm867_vm15, %v3198_v29, %v2756_v56  ;;  %v952_v6 = vsel %vm868_vm0, %v3200_v30, %v2757_v52  ;;  %v2787_v7 = vunpack.i.h.bf16 %v2785_v62  ;;  %v2786_v8 = vunpack.i.l.bf16 %v2785_v62  ;;  %v3315_v52 = vld [vmem:[%s237_s9] sm:$0xff] }
 0x18d   : > { %v2770_v9 = vpop.permute.xlu0 %2769  ;;  %v958_v10 = vpack.c.bf16 %v952_v6, %v951_v0  ;;  %vm286_vm2 = vcmp.gt.f32.partialorder %v3315_v52, 0.0  ;;  %v3319_v56 = vsub.s32 1, %v3166_v54 }
 0x18e   : > { %v2772_v12 = vunpack.i.h.bf16 %v2770_v9  ;;  %v2771_v13 = vunpack.i.l.bf16 %v2770_v9  ;;  %v911_v14 = vsel %vm871_vm13, %v3222_v50, %v2786_v8  ;;  %v912_v58 = vsel %vm872_vm14, %v3226_v55, %v2787_v7 }
 0x18f   : > { %1023 = vrot.lane.b32.xlu0 %v958_v10, %s2986_s30  ;;  %v916_v60 = vpack.c.bf16 %v912_v58, %v911_v14  ;;  %v3327_v14 = vld [vmem:[%s237_s9 + $0x10] sm:$0xff] }
 0x190   : > { %v907_v15 = vsel %vm867_vm15, %v3198_v29, %v2771_v13  ;;  %v908_v16 = vsel %vm868_vm0, %v3200_v30, %v2772_v12  ;;  %v1178_v29 = vsel %vm286_vm2, 1, %v2984_v2  ;;  %v3325_v13 = vld [vmem:[%s237_s9 + $0x8] sm:$0xff]  ;;  %vm288_vm6 = vcmp.gt.f32.partialorder %v3327_v14, 0.0 }
 0x191   : > { %v2780_v18 = vpop.permute.xlu0 %2779  ;;  %v914_v19 = vpack.c.bf16 %v908_v16, %v907_v15  ;;  %1126 = vrot.lane.b32.xlu1 %v916_v60, %s2989_s5  ;;  %v1185_v30 = vrot.slane %v1178_v29, %v3319_v56  ;;  %vm287_vm5 = vcmp.gt.f32.partialorder %v3325_v13, 0.0  ;;  %v1180_v60 = vsel %vm288_vm6, 1, %v2984_v2  ;;  %v3333_v15 = vld [vmem:[%s237_s9 + $0x18] sm:$0xff] }
 0x192   : > { %v2782_v21 = vunpack.i.h.bf16 %v2780_v18  ;;  %v2781_v22 = vunpack.i.l.bf16 %v2780_v18  ;;  %v1179_v58 = vsel %vm287_vm5, 1, %v2984_v2  ;;  %v1193_v18 = vrot.slane %v1180_v60, %v3319_v56 }
 0x193   : > { %1020 = vrot.lane.b32.xlu0 %v914_v19, %s2989_s5  ;;  %vm1198_vm3 = vcmp.eq.s32.totalorder %v1185_v30, 1  ;;  %v1189_v16 = vrot.slane %v1179_v58, %v3319_v56  ;;  %vm289_vm7 = vcmp.gt.f32.partialorder %v3333_v15, 0.0  ;;  %vm1748_vm15 = vcmask 523264  }
 0x194   : > { %v909_v59 = vsel %vm869_vm11, %v3209_v40, %v2781_v22  ;;  %v910_v23 = vsel %vm870_vm12, %v3214_v45, %v2782_v21  ;;  %vm3338_vm10 = vcmp.eq.s32.totalorder %v1193_v18, 1  ;;  %v1181_v21 = vsel %vm289_vm7, 1, %v2984_v2 }
 0x195   : > { %v915_v25 = vpack.c.bf16 %v910_v23, %v909_v59  ;;  %vm1199_vm9 = vcmp.eq.s32.totalorder %v1189_v16, 1 }
 0x197   : > { %1073 = vrot.lane.b32.xlu0 %v915_v25, %s2989_s5 }
 0x1eb   : > { %v967_v28 = vpop.permute.xlu1 %966 }
 0x1ec   : > { %v970_v26 = vpop.permute.xlu0 %969 }
 0x1ed   : > { %v976_v27 = vsel %vm971_vm1, %v970_v26, 0 }
 0x1ee   : > { %2621 = vmatpush3.bf16.xpose.msra.mxu1 %v976_v27 }
 0x1ef   : > { %2626 = vmatprep.subr.bf16.mxu1 %v2987_v4 }
 0x1f4   : > { %v1077_v31 = vpop.permute.xlu1 %1076 }
 0x1f5   : > { %v1082_v33 = vsel %vm971_vm1, %v1077_v31, 0  ;;  %2623 = vmatmul.mubr.msk.bf16.vlgmr.msra.gmra.mrb[8].mxu1 %vm971_vm1, %v967_v28 }
 0x1f6   : > { %2633 = vmatpush3.bf16.xpose.msra.mxu0 %v1082_v33  ;;  %2628 = vmatprep.mubr.msk.bf16.mxu1 %vm2988_vm8, %v2987_v4 }
 0x1f7   : > { %2644 = vmatprep.subr.bf16.mxu0 %v2987_v4 }
 0x1fc   : > { %v1130_v39 = vpop.permute.xlu1 %1129 }
 0x1fd   : > { %v1135_v49 = vsel %vm971_vm1, %v1130_v39, 0 }
 0x201   : > { %v1024_v63 = vpop.permute.xlu0 %1023 }
 0x202   : > { %v1029_v5 = vsel %vm971_vm1, %v1024_v63, 0 }
 0x203   : > { %2627 = vmatpush3.bf16.xpose.msra.mxu1 %v1029_v5  ;;  %v1127_v1 = vpop.permute.xlu1 %1126  ;;  %v1197_v5 = vrot.slane %v1181_v21, %v3319_v56 }
 0x204   : > { %2638 = vmatprep.subr.bf16.mxu1 %v2987_v4 }
 0x205   : > { %v1021_v35 = vpop.permute.xlu0 %1020  ;;  %vm1201_vm11 = vcmp.eq.s32.totalorder %v1197_v5, 1 }
 0x209   : > { %v1074_v44 = vpop.permute.xlu0 %1073 }
 0x20a   : > { %2629 = vmatmul.mubr.msk.bf16.vlgmr.msra.gmra.mrb[12].mxu1 %vm971_vm1, %v1021_v35  ;;  %2635 = vmatmul.mubr.msk.bf16.vlgmr.msra.gmra.mrb[16].mxu0 %vm971_vm1, %v1074_v44 }
 0x20b   : > { %2645 = vmatpush3.bf16.msra.mxu0 %v961_v46  ;;  %2639 = vmatpush3.bf16.xpose.msra.mxu1 %v1135_v49 }
 0x20c   : > { %2640 = vmatprep.mubr.msk.bf16.mxu1 %vm2988_vm8, %v2987_v4  ;;  %2650 = vmatprep.subr.bf16.mxu1 %v2987_v4 }
 0x20d   : > { %2646 = vmatprep.mubr.msk.bf16.mxu0 %vm2988_vm8, %v2987_v4  ;;  %2656 = vmatprep.subr.bf16.mxu0 %v2987_v4 }
 0x212   : > { %2641 = vmatmul.mubr.msk.bf16.vlgmr.msra.gmra.mrb[16].mxu1 %vm971_vm1, %v1127_v1 }
 0x213   : > { %2651 = vmatpush3.bf16.msra.mxu1 %v962_v11  ;;  %2652 = vmatprep.mubr.msk.bf16.mxu1 %vm2988_vm8, %v2987_v4 }
 0x214   : > { %2662 = vmatprep.subr.bf16.mxu1 %v2987_v4 }
 0x2c8   : > { %v1012_v62 = vpop.f32.mrb[8].mxu1 }
 0x2c9   : > { %v1202_v0 = vsel %vm1198_vm3, %v1012_v62, -1e+09  ;;  %v2624_v6 = vpop.f32.mrb[9].mxu1 }
 0x2ca   : > { %v1015_v7 = vpop.f32.mrb[10].mxu1  ;;  %v1211_v8 = vsel %vm1210_vm4, %v1202_v0, -inf }
 0x2cb   : > { %v1203_v9 = vsel %vm1198_vm3, %v1015_v7, -1e+09  ;;  %1212 = vmax.xlane.f32.xlu0 %v1211_v8  ;;  %v2625_v10 = vpop.f32.mrb[11].mxu1 }
 0x2cc   : > { %v1214_v12 = vsel %vm1210_vm4, %v1203_v9, -inf }
 0x2cd   : > { %1215 = vmax.xlane.f32.xlu1 %v1214_v12 }
 0x2dd   : > { %v1065_v22 = vpop.f32.mrb[12].mxu1  ;;  %v1118_v59 = vpop.f32.mrb[16].mxu0 }
 0x2de   : > { %v1204_v23 = vsel %vm1199_vm9, %v1065_v22, -1e+09  ;;  %v1206_v25 = vsel %vm3338_vm10, %v1118_v59, -1e+09  ;;  %v2630_v26 = vpop.f32.mrb[13].mxu1  ;;  %v2636_v27 = vpop.f32.mrb[17].mxu0 }
 0x2df   : > { %v1068_v28 = vpop.f32.mrb[14].mxu1  ;;  %v1121_v31 = vpop.f32.mrb[18].mxu0  ;;  %v1217_v33 = vsel %vm1210_vm4, %v1204_v23, -inf  ;;  %v1223_v63 = vsel %vm1210_vm4, %v1206_v25, -inf }
 0x2e0   : > { %v1205_v35 = vsel %vm1199_vm9, %v1068_v28, -1e+09  ;;  %1218 = vmax.xlane.f32.xlu0 %v1217_v33  ;;  %v2631_v39 = vpop.f32.mrb[15].mxu1  ;;  %1224 = vmax.xlane.f32.xlu1 %v1223_v63  ;;  %v2637_v2 = vpop.f32.mrb[19].mxu0  ;;  %v1207_v46 = vsel %vm3338_vm10, %v1121_v31, -1e+09 }
 0x2e1   : > { %v1220_v44 = vsel %vm1210_vm4, %v1205_v35, -inf  ;;  %v1226_v62 = vsel %vm1210_vm4, %v1207_v46, -inf }
 0x2e4   : > { %1221 = vmax.xlane.f32.xlu0 %v1220_v44 }
 0x2e5   : > { %v1171_v49 = vpop.f32.mrb[16].mxu1 }
 0x2e6   : > { %v1208_v1 = vsel %vm1201_vm11, %v1171_v49, -1e+09  ;;  %v2642_v11 = vpop.f32.mrb[17].mxu1 }
 0x2e7   : > { %v1174_v29 = vpop.f32.mrb[18].mxu1  ;;  %v1229_v30 = vsel %vm1210_vm4, %v1208_v1, -inf }
 0x2e8   : > { %v1209_v6 = vsel %vm1201_vm11, %v1174_v29, -1e+09  ;;  %v2643_v7 = vpop.f32.mrb[19].mxu1  ;;  %1230 = vmax.xlane.f32.xlu1 %v1229_v30  ;;  %1227 = vmax.xlane.f32.xlu0 %v1226_v62 }
 0x2e9   : > { %v1232_v8 = vsel %vm1210_vm4, %v1209_v6, -inf }
 0x2ec   : > { %1233 = vmax.xlane.f32.xlu0 %v1232_v8 }
 0x358   : > { %v1213_v10 = vpop.xlane.xlu0 %1212 }
 0x359   : > { %v1235_v12 = vsub.f32 %v1202_v0, %v1213_v10 }
 0x35a   : > { %v1216_v58 = vpop.xlane.xlu1 %1215 }
 0x35b   : > { %v1243_v60 = vmul.f32 1.442695, %v1235_v12  ;;  %v1236_v16 = vsub.f32 %v1203_v9, %v1216_v58 }
 0x35d   : > { %2840 = vpow2.f32 %v1243_v60  ;;  %v1245_v18 = vmul.f32 1.442695, %v1236_v16 }
 0x35f   : > { %2842 = vpow2.f32 %v1245_v18  ;;  %v3387_v18 = vunpack.c.l.bf16 %v3164_v53 }
 0x367   : > { %v3354_v19 = vpop.eup %2840 }
 0x368   : > { %v1259_v21 = vsel %vm1210_vm4, %v3354_v19, 0.0 }
 0x369   : > { %v3358_v22 = vpop.eup %2842  ;;  %1260 = vadd.xlane.f32.xlu1 %v1259_v21  ;;  %v358_v21 = vrot.slane %v3387_v18, %v3173_v57 }
 0x36a   : > { %v1262_v59 = vsel %vm1210_vm4, %v3358_v22, 0.0 }
 0x36b   : > { %1263 = vadd.xlane.f32.xlu0 %v1262_v59  ;;  %v3392_v59 = vadd.f32 %v3177_v61, %v358_v21  ;;  %v3403_v53 = vadd.f32 %v3181_v3, %v358_v21  ;;  %v3408_v61 = vadd.f32 %v3211_v41, %v358_v21  ;;  %v3419_v3 = vadd.f32 %v3219_v47, %v358_v21 }
 0x36d   : > { %v1225_v26 = vpop.xlane.xlu1 %1224  ;;  %v1219_v0 = vpop.xlane.xlu0 %1218  ;;  %v2488_v41 = vmul.f32 -1.442695, %v3392_v59 }
 0x36e   : > { %v1239_v27 = vsub.f32 %v1206_v25, %v1225_v26  ;;  %v1237_v28 = vsub.f32 %v1204_v23, %v1219_v0  ;;  %v3396_v26 = vadd.f32 %v3190_v17, %v358_v21  ;;  %v3400_v0 = vadd.f32 %v3195_v24, %v358_v21 }
 0x36f   : > { %v3416_v17 = vadd.f32 %v3224_v51, %v358_v21 }
 0x370   : > { %v1247_v9 = vmul.f32 1.442695, %v1237_v28  ;;  %v1251_v31 = vmul.f32 1.442695, %v1239_v27  ;;  %v3411_v27 = vadd.f32 %v3204_v34, %v358_v21  ;;  %v2489_v28 = vmul.f32 -1.442695, %v3403_v53 }
 0x371   : > { %v1222_v33 = vpop.xlane.xlu0 %1221  ;;  %v2491_v51 = vmul.f32 -1.442695, %v3400_v0 }
 0x372   : > { %v1238_v63 = vsub.f32 %v1205_v35, %v1222_v33  ;;  %2844 = vpow2.f32 %v1247_v9  ;;  %v2490_v9 = vmul.f32 -1.442695, %v3396_v26  ;;  %v2492_v47 = vmul.f32 -1.442695, %v3411_v27 }
 0x373   : > { %2846 = vpow2.f32 %v1251_v31 }
 0x374   : > { %v1249_v5 = vmul.f32 1.442695, %v1238_v63  ;;  %v2493_v63 = vmul.f32 -1.442695, %v3408_v61 }
 0x375   : > { %v1231_v39 = vpop.xlane.xlu1 %1230  ;;  %v1228_v2 = vpop.xlane.xlu0 %1227 }
 0x376   : > { %2848 = vpow2.f32 %v1249_v5  ;;  %v1241_v44 = vsub.f32 %v1208_v1, %v1231_v39  ;;  %v1240_v49 = vsub.f32 %v1207_v46, %v1228_v2 }
 0x378   : > { %v1255_v11 = vmul.f32 1.442695, %v1241_v44  ;;  %v1253_v29 = vmul.f32 1.442695, %v1240_v49  ;;  %v2494_v44 = vmul.f32 -1.442695, %v3419_v3 }
 0x379   : > { %v1234_v30 = vpop.xlane.xlu0 %1233 }
 0x37a   : > { %2850 = vpow2.f32 %v1255_v11  ;;  %v1242_v62 = vsub.f32 %v1209_v6, %v1234_v30  ;;  %v963_v11 = vpack.c.bf16 %v3214_v45, %v3209_v40  ;;  %v2495_v30 = vmul.f32 -1.442695, %v3416_v17 }
 0x37b   : > { %2852 = vpow2.f32 %v1253_v29 }
 0x37c   : > { %v1257_v25 = vmul.f32 1.442695, %v1242_v62  ;;  %v3362_v23 = vpop.eup %2844 }
 0x37d   : > { %v1265_v35 = vsel %vm1210_vm4, %v3362_v23, 0.0  ;;  %v3366_v7 = vpop.eup %2846 }
 0x37e   : > { %2854 = vpow2.f32 %v1257_v25  ;;  %1266 = vadd.xlane.f32.xlu1 %v1265_v35  ;;  %v1271_v1 = vsel %vm1210_vm4, %v3366_v7, 0.0 }
 0x380   : > { %v3368_v8 = vpop.eup %2848 }
 0x381   : > { %v1268_v46 = vsel %vm1210_vm4, %v3368_v8, 0.0 }
 0x382   : > { %1269 = vadd.xlane.f32.xlu0 %v1268_v46  ;;  %1272 = vadd.xlane.f32.xlu1 %v1271_v1 }
 0x384   : > { %v3374_v6 = vpop.eup %2850 }
 0x385   : > { %v3376_v10 = vpop.eup %2852  ;;  %v1277_v12 = vsel %vm1210_vm4, %v3374_v6, 0.0 }
 0x386   : > { %v1274_v58 = vsel %vm1210_vm4, %v3376_v10, 0.0  ;;  %1278 = vadd.xlane.f32.xlu1 %v1277_v12 }
 0x387   : > { %1275 = vadd.xlane.f32.xlu0 %v1274_v58 }
 0x388   : > { %v3382_v60 = vpop.eup %2854 }
 0x389   : > { %v1280_v16 = vsel %vm1210_vm4, %v3382_v60, 0.0 }
 0x38b   : > { %1281 = vadd.xlane.f32.xlu0 %v1280_v16 }
 0x397   : > { %689 = vrot.lane.b32.xlu1 %v3392_v59, %s2990_s10 }
 0x39b   : > { %693 = vrot.lane.b32.xlu1 %v3396_v26, %s2990_s10 }
 0x39f   : > { %695 = vrot.lane.b32.xlu1 %v3400_v0, %s2990_s10 }
 0x3a1   : > { %691 = vrot.lane.b32.xlu0 %v3403_v53, %s2990_s10 }
 0x3a3   : > { %699 = vrot.lane.b32.xlu1 %v3408_v61, %s2990_s10 }
 0x3a5   : > { %697 = vrot.lane.b32.xlu0 %v3411_v27, %s2990_s10 }
 0x3a7   : > { %703 = vrot.lane.b32.xlu1 %v3416_v17, %s2990_s10 }
 0x3a9   : > { %701 = vrot.lane.b32.xlu0 %v3419_v3, %s2990_s10 }
 0x3f6   : > { %v1261_v24 = vpop.xlane.xlu1 %1260 }
 0x3f7   : > { %2856 = vrcp.f32 %v1261_v24 }
 0x3f8   : > { %v1264_v34 = vpop.xlane.xlu0 %1263 }
 0x3f9   : > { %2858 = vrcp.f32 %v1264_v34 }
 0x3fa   : > { %2860 = vpow2.f32 %v2488_v41 }
 0x3fb   : > { %2862 = vpow2.f32 %v2489_v28 }
 0x3fc   : > { %2864 = vpow2.f32 %v2490_v9 }
 0x3fd   : > { %2866 = vpow2.f32 %v2491_v51 }
 0x3fe   : > { %2868 = vpow2.f32 %v2492_v47 }
 0x3ff   : > { %2870 = vpow2.f32 %v2493_v63 }
 0x400   : > { %2872 = vpow2.f32 %v2494_v44 }
 0x401   : > { %v2857_v31 = vpop.eup %2856 }
 0x402   : > { %v1291_v5 = vmul.f32 %v2857_v31, %v3354_v19 }
 0x403   : > { %v2859_v33 = vpop.eup %2858 }
 0x404   : > { %v1292_v39 = vmul.f32 %v2859_v33, %v3358_v22  ;;  %v2861_v2 = vpop.eup %2860 }
 0x405   : > { %v657_v29 = vadd.f32 1.0, %v2861_v2  ;;  %v2863_v19 = vpop.eup %2862 }
 0x406   : > { %v1299_v49 = vpack.c.bf16 %v1292_v39, %v1291_v5  ;;  %v2865_v22 = vpop.eup %2864  ;;  %v658_v35 = vadd.f32 1.0, %v2863_v19 }
 0x407   : > { %2874 = vrcp.f32 %v657_v29  ;;  %v2867_v25 = vpop.eup %2866  ;;  %v659_v1 = vadd.f32 1.0, %v2865_v22 }
 0x408   : > { %2647 = vmatmul.mubr.msk.bf16.vlgmr.msra.gmra.mrb[20].mxu0 %vm1210_vm4, %v1299_v49  ;;  %2876 = vpow2.f32 %v2495_v30  ;;  %v2869_v46 = vpop.eup %2868  ;;  %v660_v45 = vadd.f32 1.0, %v2867_v25 }
 0x409   : > { %2657 = vmatpush3.bf16.msra.mxu0 %v963_v11  ;;  %2658 = vmatprep.mubr.msk.bf16.mxu0 %vm2988_vm8, %v2987_v4  ;;  %v2871_v58 = vpop.eup %2870  ;;  %v661_v16 = vadd.f32 1.0, %v2869_v46 }
 0x40a   : > { %v2873_v21 = vpop.eup %2872  ;;  %v662_v24 = vadd.f32 1.0, %v2871_v58 }
 0x40b   : > { %v1267_v62 = vpop.xlane.xlu1 %1266  ;;  %v663_v9 = vadd.f32 1.0, %v2873_v21 }
 0x40c   : > { %2878 = vrcp.f32 %v1267_v62 }
 0x40f   : > { %v1270_v40 = vpop.xlane.xlu0 %1269  ;;  %v1273_v12 = vpop.xlane.xlu1 %1272 }
 0x410   : > { %2880 = vrcp.f32 %v1270_v40 }
 0x411   : > { %2882 = vrcp.f32 %v658_v35  ;;  %v3438_v28 = vpop.eup %2874 }
 0x412   : > { %2884 = vrcp.f32 %v659_v1  ;;  %v2877_v51 = vpop.eup %2876 }
 0x413   : > { %2886 = vrcp.f32 %v1273_v12  ;;  %v1279_v41 = vpop.xlane.xlu1 %1278  ;;  %v664_v39 = vadd.f32 1.0, %v2877_v51 }
 0x414   : > { %2888 = vrcp.f32 %v660_v45  ;;  %v1276_v34 = vpop.xlane.xlu0 %1275 }
 0x415   : > { %2890 = vrcp.f32 %v661_v16 }
 0x416   : > { %2892 = vrcp.f32 %v1276_v34  ;;  %v2879_v47 = vpop.eup %2878 }
 0x417   : > { %2894 = vrcp.f32 %v1279_v41  ;;  %v690_v33 = vpop.permute.xlu1 %689  ;;  %v1293_v44 = vmul.f32 %v2879_v47, %v3362_v23  ;;  %v964_v23 = vpack.c.bf16 %v3226_v55, %v3222_v50 }
 0x418   : > { %2896 = vrcp.f32 %v662_v24  ;;  %v1282_v31 = vpop.xlane.xlu0 %1281  ;;  %v713_v63 = vmul.f32 %v3438_v28, %v690_v33 }
 0x419   : > { %2898 = vrcp.f32 %v1282_v31 }
 0x41a   : > { %v2881_v5 = vpop.eup %2880  ;;  %2900 = vrcp.f32 %v663_v9  ;;  %729 = vrot.lane.b32.xlu0 %v713_v63, %s2986_s30 }
 0x41b   : > { %v3441_v2 = vpop.eup %2882  ;;  %v1294_v49 = vmul.f32 %v2881_v5, %v3368_v8  ;;  %v694_v30 = vpop.permute.xlu1 %693  ;;  %2902 = vrcp.f32 %v664_v39 }
 0x41c   : > { %v3446_v11 = vpop.eup %2884  ;;  %v692_v29 = vpop.permute.xlu0 %691 }
 0x41d   : > { %v2887_v19 = vpop.eup %2886  ;;  %v714_v22 = vmul.f32 %v3441_v2, %v692_v29  ;;  %v715_v62 = vmul.f32 %v3446_v11, %v694_v30  ;;  %v1300_v25 = vpack.c.bf16 %v1294_v49, %v1293_v44 }
 0x41e   : > { %v3450_v35 = vpop.eup %2888  ;;  %v1295_v1 = vmul.f32 %v2887_v19, %v3366_v7 }
 0x41f   : > { %v3452_v46 = vpop.eup %2890  ;;  %731 = vrot.lane.b32.xlu1 %v714_v22, %s2986_s30  ;;  %733 = vrot.lane.b32.xlu0 %v715_v62, %s2986_s30  ;;  %v696_v45 = vpop.permute.xlu1 %695 }
 0x420   : > { %v2893_v8 = vpop.eup %2892  ;;  %2653 = vmatmul.mubr.msk.bf16.vlgmr.msra.gmra.mrb[20].mxu1 %vm1210_vm4, %v1300_v25  ;;  %v698_v40 = vpop.permute.xlu0 %697  ;;  %v716_v21 = vmul.f32 %v3450_v35, %v696_v45 }
 0x421   : > { %v2895_v12 = vpop.eup %2894  ;;  %v1296_v58 = vmul.f32 %v2893_v8, %v3376_v10  ;;  %2663 = vmatpush3.bf16.msra.mxu1 %v964_v23  ;;  %v717_v16 = vmul.f32 %v3452_v46, %v698_v40  ;;  %2664 = vmatprep.mubr.msk.bf16.mxu1 %vm2988_vm8, %v2987_v4 }
 0x422   : > { %v3465_v24 = vpop.eup %2896  ;;  %v1297_v10 = vmul.f32 %v2895_v12, %v3374_v6 }
 0x423   : > { %v2899_v50 = vpop.eup %2898  ;;  %735 = vrot.lane.b32.xlu1 %v716_v21, %s2986_s30  ;;  %737 = vrot.lane.b32.xlu0 %v717_v16, %s2986_s30  ;;  %v1301_v55 = vpack.c.bf16 %v1296_v58, %v1295_v1  ;;  %v700_v9 = vpop.permute.xlu1 %699 }
 0x424   : > { %v3469_v7 = vpop.eup %2900  ;;  %v1298_v41 = vmul.f32 %v2899_v50, %v3382_v60  ;;  %v702_v34 = vpop.permute.xlu0 %701  ;;  %v718_v51 = vmul.f32 %v3465_v24, %v700_v9 }
 0x425   : > { %2659 = vmatmul.mubr.msk.bf16.vlgmr.msra.gmra.mrb[24].mxu0 %vm1210_vm4, %v1301_v55  ;;  %v719_v4 = vmul.f32 %v3469_v7, %v702_v34  ;;  %v3478_v31 = vpop.eup %2902 }
 0x426   : > { %v1302_v47 = vpack.c.bf16 %v1298_v41, %v1297_v10 }
 0x427   : > { %739 = vrot.lane.b32.xlu1 %v718_v51, %s2986_s30  ;;  %741 = vrot.lane.b32.xlu0 %v719_v4, %s2986_s30  ;;  %v704_v6 = vpop.permute.xlu1 %703 }
 0x428   : > { %2665 = vmatmul.mubr.msk.bf16.vlgmr.msra.gmra.mrb[24].mxu1 %vm1210_vm4, %v1302_v47  ;;  %v720_v60 = vmul.f32 %v3478_v31, %v704_v6 }
 0x42b   : > { %743 = vrot.lane.b32.xlu1 %v720_v60, %s2986_s30  ;;  %1488 = vperm.xlu0 %2788, %v3129_v38  }
 0x42f   : > { %1491 = vperm.xlu1 %2789, %v3139_v42   ;;  %1497 = vperm.xlu0 %2788, %v3123_v36  }
 0x433   : > { %1494 = vperm.xlu1 %2789, %v3115_v32  }
 0x48c   : > { %v730_v33 = vpop.permute.xlu0 %729 }
 0x48d   : > { %v753_v63 = vadd.f32 %v730_v33, %v3392_v59 }
 0x48f   : > { %2904 = vtanh.f32 %v753_v63 }
 0x491   : > { %v732_v5 = vpop.permute.xlu1 %731  ;;  %v734_v39 = vpop.permute.xlu0 %733 }
 0x492   : > { %v754_v44 = vadd.f32 %v732_v5, %v3403_v53  ;;  %v755_v49 = vadd.f32 %v734_v39, %v3396_v26 }
 0x494   : > { %2906 = vtanh.f32 %v754_v44 }
 0x495   : > { %2908 = vtanh.f32 %v755_v49  ;;  %v736_v29 = vpop.permute.xlu1 %735  ;;  %v738_v19 = vpop.permute.xlu0 %737  ;;  %v769_v49 = vsub.f32 1.0, %v3438_v28 }
 0x496   : > { %v756_v30 = vadd.f32 %v736_v29, %v3400_v0  ;;  %v757_v59 = vadd.f32 %v738_v19, %v3411_v27  ;;  %v2991_v27 = vmov 2   ;;  %v2827_v19 = vld [vmem:[%s3735_s3 + $0x108] ss:$12 sps:$4 sm:$0xff]  }
 0x498   : > { %2910 = vtanh.f32 %v756_v30  ;;  %v2826_v30 = vld [vmem:[%s3735_s3 + $0xf0] ss:$12 sps:$4 sm:$0xff]  }
 0x499   : > { %v2905_v22 = vpop.eup %2904  ;;  %v740_v62 = vpop.permute.xlu1 %739  ;;  %2912 = vtanh.f32 %v757_v59  ;;  %2680 = vmatprep.subr.bf16.mxu1 %v2826_v30 }
 0x49a   : > { %785 = vrot.lane.b32.xlu1 %v2905_v22, %s2989_s5  ;;  %v742_v23 = vpop.permute.xlu0 %741  ;;  %v758_v26 = vadd.f32 %v740_v62, %v3408_v61  ;;  %v2968_v22 = vld [vmem:[%s3079_s27] sm:$0xff]  ;;  %2681 = vmatpush3.bf16.msra.mxu1 %v2826_v30 }
 0x49b   : > { %v759_v0 = vadd.f32 %v742_v23, %v3419_v3  ;;  %v817_v62 = vmul.f32 %v2968_v22, %v3438_v28  ;;  %v770_v23 = vsub.f32 1.0, %v3441_v2  ;;  %2682 = vmatprep.subr.bf16.mxu1 %v2827_v19  ;;  %v2970_v28 = vld [vmem:[%s3079_s27 + $0x10] sm:$0xff] }
 0x49c   : > { %2914 = vtanh.f32 %v758_v26 }
 0x49d   : > { %v744_v53 = vpop.permute.xlu1 %743  ;;  %2916 = vtanh.f32 %v759_v0 }
 0x49e   : > { %v2907_v25 = vpop.eup %2906  ;;  %v760_v40 = vadd.f32 %v744_v53, %v3416_v17  ;;  %v2969_v53 = vld [vmem:[%s3079_s27 + $0x8] sm:$0xff]  ;;  %2683 = vmatpush3.bf16.msra.mxu1 %v2827_v19 }
 0x49f   : > { %v2909_v8 = vpop.eup %2908  ;;  %787 = vrot.lane.b32.xlu0 %v2907_v25, %s2989_s5 }
 0x4a0   : > { %789 = vrot.lane.b32.xlu1 %v2909_v8, %s2989_s5  ;;  %2918 = vtanh.f32 %v760_v40  ;;  %v771_v8 = vsub.f32 1.0, %v3446_v11 }
 0x4a2   : > { %v2911_v1 = vpop.eup %2910 }
 0x4a3   : > { %791 = vrot.lane.b32.xlu0 %v2911_v1, %s2989_s5  ;;  %v2913_v61 = vpop.eup %2912  ;;  %v818_v1 = vmul.f32 %v2969_v53, %v3441_v2  ;;  %v2828_v2 = vld [vmem:[%s3735_s3 + $0xc0] ss:$12 sps:$4 sm:$0xff]   ;;  %v775_v53 = vsub.f32 1.0, %v3469_v7 }
 0x4a4   : > { %1500 = vperm.xlu1 %2789, %v3126_v37   ;;  %2668 = vmatprep.subr.bf16.mxu0 %v2828_v2 }
 0x4a5   : > { %2669 = vmatpush3.bf16.msra.mxu0 %v2828_v2 }
 0x4a6   : > { %v2915_v3 = vpop.eup %2914 }
 0x4a7   : > { %1503 = vperm.xlu0 %2788, %v3142_v43   ;;  %v2917_v45 = vpop.eup %2916 }
 0x4a8   : > { %1506 = vperm.xlu1 %2789, %v3152_v48  }
 0x4aa   : > { %v2919_v17 = vpop.eup %2918  ;;  %v1489_v5 = vpop.permute.xlu0 %1488 }
 0x4ab   : > { %1509 = vperm.xlu0 %2788, %v3193_v20   ;;  %vm1511_vm8 = vcmp.eq.s32.totalorder %v1489_v5, 1  ;;  %v1711_v5 = vrot.slane %v3325_v13, %v3173_v57 }
 0x4ac   : > { %793 = vrot.lane.b32.xlu1 %v2913_v61, %s2989_s5 }
 0x4ad   : > { %2790 = vset.pattern.permute.xlu1 %v2991_v27  ;;  %v1721_v13 = vpack.c.bf16 %v1711_v5, %v1711_v5 }
 0x4ae   : > { %v1492_v63 = vpop.permute.xlu1 %1491  ;;  %v1498_v44 = vpop.permute.xlu0 %1497 }
 0x4af   : > { %795 = vrot.lane.b32.xlu0 %v2915_v3, %s2989_s5  ;;  %v819_v3 = vmul.f32 %v2970_v28, %v3446_v11  ;;  %vm1512_vm12 = vcmp.eq.s32.totalorder %v1492_v63, 1  ;;  %v2829_v11 = vld [vmem:[%s3735_s3 + $0x120] ss:$12 sps:$4 sm:$0xff]   ;;  %vm1514_vm14 = vcmp.eq.s32.totalorder %v1498_v44, 1 }
 0x4b0   : > { %797 = vrot.lane.b32.xlu1 %v2917_v45, %s2989_s5  ;;  %2791 = vset.pattern.permute.xlu0 %v2991_v27 }
 0x4b1   : > { %2684 = vmatprep.subr.bf16.mxu1 %v2829_v11 }
 0x4b2   : > { %v1495_v39 = vpop.permute.xlu1 %1494  ;;  %2685 = vmatpush3.bf16.msra.mxu1 %v2829_v11  ;;  %v2975_v11 = vld [vmem:[%s3079_s27 + $0x38] sm:$0xff] }
 0x4b3   : > { %799 = vrot.lane.b32.xlu0 %v2919_v17, %s2989_s5  ;;  %v772_v17 = vsub.f32 1.0, %v3450_v35  ;;  %vm1513_vm13 = vcmp.eq.s32.totalorder %v1495_v39, 1  ;;  %v2831_v39 = vld [vmem:[%s3735_s3 + $0x138] ss:$12 sps:$4 sm:$0xff]  }
 0x4b4   : > { %1528 = vperm.xlu1 %2790, %v3129_v38   ;;  %2686 = vmatprep.subr.bf16.mxu1 %v2831_v39 }
 0x4b6   : > { %2687 = vmatpush3.bf16.msra.mxu1 %v2831_v39 }
 0x4b7   : > { %1531 = vperm.xlu0 %2791, %v3139_v42  }
 0x4b8   : > { %1534 = vperm.xlu1 %2790, %v3115_v32  }
 0x4bb   : > { %1540 = vperm.xlu0 %2791, %v3126_v37  }
 0x4bc   : > { %1537 = vperm.xlu1 %2790, %v3123_v36  }
 0x4c0   : > { %1543 = vperm.xlu1 %2790, %v3142_v43  }
 0x4db   : > { %v3513_v12 = vpop.f32.mrb[20].mxu0 }
 0x4dc   : > { %v2648_v58 = vpop.f32.mrb[21].mxu0  ;;  %2920 = vtanh.f32 %v3513_v12 }
 0x4dd   : > { %v3515_v16 = vpop.f32.mrb[22].mxu0 }
 0x4de   : > { %v2649_v21 = vpop.f32.mrb[23].mxu0  ;;  %2922 = vtanh.f32 %v3515_v16 }
 0x4f3   : > { %v3517_v50 = vpop.f32.mrb[20].mxu1 }
 0x4f4   : > { %v2654_v55 = vpop.f32.mrb[21].mxu1  ;;  %2924 = vtanh.f32 %v3517_v50 }
 0x4f5   : > { %v3519_v10 = vpop.f32.mrb[22].mxu1 }
 0x4f6   : > { %v2655_v41 = vpop.f32.mrb[23].mxu1  ;;  %2926 = vtanh.f32 %v3519_v10 }
 0x4f8   : > { %v3521_v34 = vpop.f32.mrb[24].mxu0 }
 0x4f9   : > { %v2660_v9 = vpop.f32.mrb[25].mxu0  ;;  %2928 = vtanh.f32 %v3521_v34 }
 0x4fa   : > { %v3523_v4 = vpop.f32.mrb[26].mxu0  ;;  %v2971_v9 = vld [vmem:[%s3079_s27 + $0x18] sm:$0xff] }
 0x4fb   : > { %v2661_v51 = vpop.f32.mrb[27].mxu0  ;;  %v3525_v47 = vpop.f32.mrb[24].mxu1  ;;  %2930 = vtanh.f32 %v3523_v4 }
 0x4fc   : > { %v2666_v6 = vpop.f32.mrb[25].mxu1  ;;  %v820_v51 = vmul.f32 %v2971_v9, %v3450_v35  ;;  %v1715_v35 = vrot.slane %v3327_v14, %v3173_v57  ;;  %v1719_v14 = vrot.slane %v3333_v15, %v3173_v57  ;;  %v774_v15 = vsub.f32 1.0, %v3465_v24 }
 0x4fd   : > { %v3527_v60 = vpop.f32.mrb[26].mxu1  ;;  %v1707_v6 = vrot.slane %v3315_v52, %v3173_v57  ;;  %v2830_v52 = vld [vmem:[%s3735_s3 + $0xd8] ss:$12 sps:$4 sm:$0xff]   ;;  %v824_v9 = vmul.f32 %v2975_v11, %v3478_v31  ;;  %2932 = vtanh.f32 %v3525_v47 }
 0x4fe   : > { %v2667_v33 = vpop.f32.mrb[27].mxu1  ;;  %2670 = vmatprep.subr.bf16.mxu0 %v2830_v52  ;;  %v1722_v30 = vpack.c.bf16 %v1715_v35, %v1715_v35  ;;  %v1723_v22 = vpack.c.bf16 %v1719_v14, %v1719_v14  ;;  %2934 = vtanh.f32 %v3527_v60  ;;  %v2833_v14 = vld [vmem:[%s3735_s3 + $0x1c8] ss:$12 sps:$4 sm:$0xff]  }
 0x4ff   : > { %2671 = vmatpush3.bf16.msra.mxu0 %v2830_v52 }
 0x50c   : > { %v786_v29 = vpop.permute.xlu1 %785 }
 0x50d   : > { %v809_v59 = vmul.f32 %v786_v29, %v769_v49  ;;  %v1720_v49 = vpack.c.bf16 %v1707_v6, %v1707_v6 }
 0x50f   : > { %v825_v25 = vadd.f32 %v817_v62, %v809_v59  ;;  %2688 = vmatprep.mubr.msk.bf16.mxu1 %vm1748_vm15, %v1720_v49  ;;  %v773_v59 = vsub.f32 1.0, %v3452_v46 }
 0x510   : > { %2689 = vmatmul.mubr.msk.bf16.vlgmr.msra.gmra.mrb[28].mxu1 %vm1748_vm15, %v1721_v13 }
 0x511   : > { %v788_v26 = vpop.permute.xlu0 %787  ;;  %v1519_v61 = vsel %vm1511_vm8, %v825_v25, 0.0  ;;  %2692 = vmatprep.mubr.msk.bf16.mxu1 %vm1748_vm15, %v1722_v30 }
 0x512   : > { %v790_v0 = vpop.permute.xlu1 %789  ;;  %v810_v40 = vmul.f32 %v788_v26, %v770_v23  ;;  %1567 = vrot.lane.b32.xlu0 %v1519_v61, %s2989_s5 }
 0x513   : > { %v811_v27 = vmul.f32 %v790_v0, %v771_v8  ;;  %v2972_v8 = vld [vmem:[%s3079_s27 + $0x20] sm:$0xff] }
 0x514   : > { %v826_v45 = vadd.f32 %v818_v1, %v810_v40  ;;  %v821_v26 = vmul.f32 %v2972_v8, %v3452_v46  ;;  %v3585_v40 = vld [vmem:[%s3735_s3 + $0x1b0] ss:$12 sps:$4 sm:$0xff]   ;;  %v2992_v46 = vmov 3  }
 0x515   : > { %v792_v58 = vpop.permute.xlu0 %791  ;;  %v827_v21 = vadd.f32 %v819_v3, %v811_v27  ;;  %v2973_v27 = vld [vmem:[%s3079_s27 + $0x28] sm:$0xff]  ;;  %2696 = vmatprep.subr.bf16.mxu0 %v3585_v40 }
 0x516   : > { %v812_v55 = vmul.f32 %v792_v58, %v772_v17  ;;  %v1520_v41 = vsel %vm1512_vm12, %v826_v45, 0.0  ;;  %1546 = vperm.xlu0 %2791, %v3152_v48   ;;  %v822_v28 = vmul.f32 %v2973_v27, %v3465_v24  ;;  %v2974_v45 = vld [vmem:[%s3079_s27 + $0x30] sm:$0xff]  ;;  %s2728_s27 = smul.u32 24, %s3740_s19  ;;  %v2835_v27 = vld [vmem:[%s3735_s3 + $0x1f8] ss:$12 sps:$4 sm:$0xff]  }
 0x517   : > { %1569 = vrot.lane.b32.xlu1 %v1520_v41, %s2989_s5  ;;  %v1521_v63 = vsel %vm1513_vm13, %v827_v21, 0.0  ;;  %v823_v17 = vmul.f32 %v2974_v45, %v3469_v7  ;;  %v776_v41 = vsub.f32 1.0, %v3478_v31 }
 0x518   : > { %v828_v33 = vadd.f32 %v820_v51, %v812_v55  ;;  %2693 = vmatmul.mubr.msk.bf16.gmra.mrb[32].mxu1 %vm1748_vm15, %v1723_v22 }
 0x51a   : > { %1571 = vrot.lane.b32.xlu0 %v1521_v63, %s2989_s5  ;;  %v1522_v29 = vsel %vm1514_vm14, %v828_v33, 0.0 }
 0x51b   : > { %1549 = vperm.xlu1 %2790, %v3193_v20   ;;  %2792 = vset.pattern.permute.xlu0 %v2992_v46 }
 0x51f   : > { %1573 = vrot.lane.b32.xlu1 %v1522_v29, %s2989_s5 }
 0x520   : > { %2793 = vset.pattern.permute.xlu1 %v2992_v46 }
 0x523   : > { %v1501_v19 = vpop.permute.xlu1 %1500 }
 0x524   : > { %vm1515_vm0 = vcmp.eq.s32.totalorder %v1501_v19, 1 }
 0x526   : > { %v1504_v44 = vpop.permute.xlu0 %1503 }
 0x527   : > { %v1507_v62 = vpop.permute.xlu1 %1506  ;;  %vm1516_vm2 = vcmp.eq.s32.totalorder %v1504_v44, 1 }
 0x528   : > { %vm1517_vm3 = vcmp.eq.s32.totalorder %v1507_v62, 1 }
 0x52a   : > { %v1510_v25 = vpop.permute.xlu0 %1509 }
 0x52b   : > { %v794_v23 = vpop.permute.xlu1 %793  ;;  %vm1518_vm4 = vcmp.eq.s32.totalorder %v1510_v25, 1 }
 0x52c   : > { %v813_v57 = vmul.f32 %v794_v23, %v773_v59 }
 0x52e   : > { %v829_v0 = vadd.f32 %v821_v26, %v813_v57  ;;  %v796_v1 = vpop.permute.xlu0 %795 }
 0x52f   : > { %v798_v61 = vpop.permute.xlu1 %797  ;;  %v814_v3 = vmul.f32 %v796_v1, %v774_v15  ;;  %v2834_v1 = vld [vmem:[%s3735_s3 + $0x1e0] ss:$12 sps:$4 sm:$0xff]  }
 0x530   : > { %v815_v58 = vmul.f32 %v798_v61, %v775_v53  ;;  %v1523_v21 = vsel %vm1515_vm0, %v829_v0, 0.0 }
 0x531   : > { %v830_v55 = vadd.f32 %v822_v28, %v814_v3  ;;  %1575 = vrot.lane.b32.xlu0 %v1523_v21, %s2989_s5  ;;  %v1614_v21 = vrot.slane %v3387_v18, %v3319_v56 }
 0x532   : > { %v831_v2 = vadd.f32 %v823_v17, %v815_v58  ;;  %v800_v24 = vpop.permute.xlu0 %799  ;;  %v1828_v17 = vsub.s32 2, %v3166_v54 }
 0x533   : > { %v816_v51 = vmul.f32 %v800_v24, %v776_v41  ;;  %v1524_v6 = vsel %vm1516_vm2, %v830_v55, 0.0  ;;  %v1529_v31 = vpop.permute.xlu1 %1528 }
 0x534   : > { %v1525_v33 = vsel %vm1517_vm3, %v831_v2, 0.0  ;;  %1577 = vrot.lane.b32.xlu1 %v1524_v6, %s2989_s5  ;;  %vm1551_vm5 = vcmp.eq.s32.totalorder %v1529_v31, 1  ;;  %v1829_v58 = vrot.slane %v3387_v18, %v1828_v17 }
 0x535   : > { %v832_v7 = vadd.f32 %v824_v9, %v816_v51  ;;  %1579 = vrot.lane.b32.xlu0 %v1525_v33, %s2989_s5 }
 0x536   : > { %v1532_v35 = vpop.permute.xlu0 %1531 }
 0x537   : > { %v1526_v63 = vsel %vm1518_vm4, %v832_v7, 0.0  ;;  %v1535_v5 = vpop.permute.xlu1 %1534  ;;  %vm1552_vm6 = vcmp.eq.s32.totalorder %v1532_v35, 1 }
 0x538   : > { %1581 = vrot.lane.b32.xlu1 %v1526_v63, %s2989_s5  ;;  %s3613_s5 = scalar_lea.vmem %s3736_s4, %s2728_s27  ;;  %vm1553_vm7 = vcmp.eq.s32.totalorder %v1535_v5, 1 }
 0x539   : > { %1952 = vperm.xlu0 %2792, %v3129_v38  }
 0x53b   : > { %v1538_v38 = vpop.permute.xlu1 %1537 }
 0x53c   : > { %1955 = vperm.xlu1 %2793, %v3139_v42   ;;  %v1541_v42 = vpop.permute.xlu0 %1540  ;;  %vm1554_vm9 = vcmp.eq.s32.totalorder %v1538_v38, 1 }
 0x53d   : > { %1961 = vperm.xlu0 %2792, %v3123_v36   ;;  %v2921_v36 = vpop.eup %2920  ;;  %vm1555_vm10 = vcmp.eq.s32.totalorder %v1541_v42, 1 }
 0x540   : > { %1958 = vperm.xlu1 %2793, %v3115_v32   ;;  %v1544_v32 = vpop.permute.xlu1 %1543 }
 0x541   : > { %1967 = vperm.xlu0 %2792, %v3142_v43   ;;  %vm1556_vm11 = vcmp.eq.s32.totalorder %v1544_v32, 1 }
 0x544   : > { %1964 = vperm.xlu1 %2793, %v3126_v37  }
 0x545   : > { %1973 = vperm.xlu0 %2792, %v3193_v20  }
 0x548   : > { %1970 = vperm.xlu1 %2793, %v3152_v48   ;;  %v2923_v48 = vpop.eup %2922 }
 0x549   : > { %v2925_v39 = vpop.eup %2924 }
 0x54a   : > { %v2927_v30 = vpop.eup %2926 }
 0x54b   : > { %v2929_v4 = vpop.eup %2928 }
 0x54c   : > { %v2931_v60 = vpop.eup %2930 }
 0x54d   : > { %v2933_v22 = vpop.eup %2932 }
 0x54e   : > { %v2935_v8 = vpop.eup %2934 }
 0x584   : > { %v1568_v37 = vpop.permute.xlu0 %1567 }
 0x585   : > { %v1591_v43 = vsel %vm1551_vm5, %v2921_v36, %v1568_v37 }
 0x586   : > { %1599 = vst.msk [vmem:[%s3613_s5] sm:$0xff] %vm971_vm1, %v1591_v43 }
 0x589   : > { %v1570_v20 = vpop.permute.xlu1 %1569 }
 0x58a   : > { %v1592_v12 = vsel %vm1552_vm6, %v2923_v48, %v1570_v20 }
 0x58b   : > { %1600 = vst.msk [vmem:[%s3613_s5 + $0x8] sm:$0xff] %vm971_vm1, %v1592_v12  ;;  %v1607_v16 = vpack.c.bf16 %v1592_v12, %v1591_v43 }
 0x58d   : > { %2672 = vmatprep.mubr.msk.bf16.mxu0 %vm971_vm1, %v1607_v16 }
 0x595   : > { %v1547_v52 = vpop.permute.xlu0 %1546 }
 0x596   : > { %vm1557_vm8 = vcmp.eq.s32.totalorder %v1547_v52, 1 }
 0x599   : > { %v1572_v29 = vpop.permute.xlu0 %1571 }
 0x59a   : > { %v1550_v49 = vpop.permute.xlu1 %1549  ;;  %v1593_v13 = vsel %vm1553_vm7, %v2925_v39, %v1572_v29 }
 0x59b   : > { %1601 = vst.msk [vmem:[%s3613_s5 + $0x18] sm:$0xff] %vm971_vm1, %v1593_v13  ;;  %vm1558_vm12 = vcmp.eq.s32.totalorder %v1550_v49, 1 }
 0x59e   : > { %v1574_v50 = vpop.permute.xlu1 %1573 }
 0x59f   : > { %v1594_v10 = vsel %vm1554_vm9, %v2927_v30, %v1574_v50 }
 0x5a0   : > { %1602 = vst.msk [vmem:[%s3613_s5 + $0x20] sm:$0xff] %vm971_vm1, %v1594_v10  ;;  %v1608_v34 = vpack.c.bf16 %v1594_v10, %v1593_v13 }
 0x5a2   : > { %2673 = vmatmul.mubr.msk.bf16.vlgmr.msra.gmra.mrb[28].mxu0 %vm971_vm1, %v1608_v34 }
 0x5a3   : > { %v1576_v47 = vpop.permute.xlu0 %1575  ;;  %2697 = vmatpush3.bf16.msra.mxu0 %v3585_v40 }
 0x5a4   : > { %v1595_v19 = vsel %vm1555_vm10, %v2929_v4, %v1576_v47  ;;  %2698 = vmatprep.subr.bf16.mxu0 %v2833_v14  ;;  %v2836_v4 = vld [vmem:[%s3735_s3 + $0x150] ss:$12 sps:$4 sm:$0xff]   ;;  %v2837_v47 = vld [vmem:[%s3735_s3 + $0x168] ss:$12 sps:$4 sm:$0xff]  }
 0x5a5   : > { %1603 = vst.msk [vmem:[%s3613_s5 + $0x30] sm:$0xff] %vm971_vm1, %v1595_v19  ;;  %2712 = vmatprep.subr.bf16.mxu1 %v2836_v4 }
 0x5a6   : > { %v1578_v44 = vpop.permute.xlu1 %1577  ;;  %2713 = vmatpush3.bf16.msra.mxu1 %v2836_v4 }
 0x5a7   : > { %v1596_v62 = vsel %vm1556_vm11, %v2931_v60, %v1578_v44  ;;  %v1580_v59 = vpop.permute.xlu0 %1579  ;;  %2699 = vmatpush3.bf16.msra.mxu0 %v2833_v14  ;;  %2714 = vmatprep.subr.bf16.mxu1 %v2837_v47  ;;  %v2839_v60 = vld [vmem:[%s3735_s3 + $0x198] ss:$12 sps:$4 sm:$0xff]  }
 0x5a8   : > { %1604 = vst.msk [vmem:[%s3613_s5 + $0x38] sm:$0xff] %vm971_vm1, %v1596_v62  ;;  %v1609_v25 = vpack.c.bf16 %v1596_v62, %v1595_v19  ;;  %v1597_v23 = vsel %vm1557_vm8, %v2933_v22, %v1580_v59  ;;  %2700 = vmatprep.subr.bf16.mxu0 %v2834_v1  ;;  %v2838_v19 = vld [vmem:[%s3735_s3 + $0x180] ss:$12 sps:$4 sm:$0xff]  }
 0x5a9   : > { %1605 = vst.msk [vmem:[%s3613_s5 + $0x48] sm:$0xff] %vm971_vm1, %v1597_v23 }
 0x5aa   : > { %v1582_v26 = vpop.permute.xlu1 %1581  ;;  %2676 = vmatprep.mubr.msk.bf16.mxu0 %vm971_vm1, %v1609_v25  ;;  %2715 = vmatpush3.bf16.msra.mxu1 %v2837_v47 }
 0x5ab   : > { %v1598_v57 = vsel %vm1558_vm12, %v2935_v8, %v1582_v26  ;;  %2701 = vmatpush3.bf16.msra.mxu0 %v2834_v1  ;;  %2716 = vmatprep.subr.bf16.mxu1 %v2838_v19 }
 0x5ac   : > { %1606 = vst.msk [vmem:[%s3613_s5 + $0x50] sm:$0xff] %vm971_vm1, %v1598_v57  ;;  %v1610_v15 = vpack.c.bf16 %v1598_v57, %v1597_v23  ;;  %2702 = vmatprep.subr.bf16.mxu0 %v2835_v27 }
 0x5ae   : > { %2677 = vmatmul.mubr.msk.bf16.gmra.mrb[32].mxu0 %vm971_vm1, %v1610_v15  ;;  %2717 = vmatpush3.bf16.msra.mxu1 %v2838_v19 }
 0x5af   : > { %2703 = vmatpush3.bf16.msra.mxu0 %v2835_v27  ;;  %2718 = vmatprep.subr.bf16.mxu1 %v2839_v60 }
 0x5b2   : > { %2719 = vmatpush3.bf16.msra.mxu1 %v2839_v60 }
 0x5b8   : > { %v1953_v22 = vpop.permute.xlu0 %1952 }
 0x5b9   : > { %vm1975_vm14 = vcmp.eq.s32.totalorder %v1953_v22, 1 }
 0x5bb   : > { %v1956_v44 = vpop.permute.xlu1 %1955 }
 0x5bc   : > { %v1962_v59 = vpop.permute.xlu0 %1961  ;;  %vm1976_vm2 = vcmp.eq.s32.totalorder %v1956_v44, 1 }
 0x5bd   : > { %vm1978_vm0 = vcmp.eq.s32.totalorder %v1962_v59, 1 }
 0x5bf   : > { %v1959_v62 = vpop.permute.xlu1 %1958 }
 0x5c0   : > { %vm1977_vm13 = vcmp.eq.s32.totalorder %v1959_v62, 1 }
 0x5e3   : > { %v2690_v0 = vpop.f32.mrb[28].mxu1 }
 0x5e4   : > { %v1795_v53 = vpop.f32.mrb[29].mxu1  ;;  %v1832_v55 = vadd.f32 %v2690_v0, %v1829_v58 }
 0x5e5   : > { %v2691_v40 = vpop.f32.mrb[30].mxu1  ;;  %v1830_v2 = vadd.f32 %v1829_v58, %v1795_v53 }
 0x5e6   : > { %v1798_v61 = vpop.f32.mrb[31].mxu1  ;;  %v1833_v9 = vadd.f32 %v2691_v40, %v1829_v58 }
 0x5e7   : > { %v1831_v33 = vadd.f32 %v1829_v58, %v1798_v61  ;;  %v1965_v61 = vpop.permute.xlu1 %1964 }
 0x5e8   : > { %vm1979_vm4 = vcmp.eq.s32.totalorder %v1965_v61, 1 }
 0x5eb   : > { %v2694_v28 = vpop.f32.mrb[32].mxu1 }
 0x5ec   : > { %v1811_v3 = vpop.f32.mrb[33].mxu1  ;;  %v1836_v32 = vadd.f32 %v2694_v28, %v1829_v58 }
 0x5ed   : > { %v2695_v46 = vpop.f32.mrb[34].mxu1  ;;  %v1834_v37 = vadd.f32 %v1829_v58, %v1811_v3 }
 0x5ee   : > { %v1814_v45 = vpop.f32.mrb[35].mxu1  ;;  %v1837_v39 = vadd.f32 %v2695_v46, %v1829_v58 }
 0x5ef   : > { %v1835_v30 = vadd.f32 %v1829_v58, %v1814_v45  ;;  %v1968_v45 = vpop.permute.xlu0 %1967 }
 0x5f0   : > { %vm1980_vm6 = vcmp.eq.s32.totalorder %v1968_v45, 1 }
 0x675   : > { %v2674_v41 = vpop.f32.mrb[28].mxu0 }
 0x676   : > { %v1682_v24 = vadd.f32 %v2674_v41, %v1614_v21  ;;  %v1673_v11 = vpop.f32.mrb[29].mxu0  ;;  %v1971_v41 = vpop.permute.xlu1 %1970 }
 0x677   : > { %v1674_v51 = vadd.f32 %v1673_v11, %v1614_v21  ;;  %v2675_v6 = vpop.f32.mrb[30].mxu0  ;;  %vm1981_vm3 = vcmp.eq.s32.totalorder %v1971_v41, 1 }
 0x678   : > { %v1840_v7 = vmul.f32 %v1832_v55, %v1682_v24  ;;  %v1685_v63 = vadd.f32 %v2675_v6, %v1614_v21  ;;  %v1676_v31 = vpop.f32.mrb[31].mxu0 }
 0x679   : > { %v1838_v5 = vmul.f32 %v1830_v2, %v1674_v51  ;;  %v1677_v35 = vadd.f32 %v1676_v31, %v1614_v21  ;;  %2107 = vrot.lane.b32.xlu1 %v1674_v51, %s2986_s30 }
 0x67a   : > { %v1841_v54 = vmul.f32 %v1833_v9, %v1685_v63  ;;  %v1974_v9 = vpop.permute.xlu0 %1973 }
 0x67b   : > { %v1839_v38 = vmul.f32 %v1831_v33, %v1677_v35  ;;  %2109 = vrot.lane.b32.xlu0 %v1677_v35, %s2986_s30  ;;  %vm1982_vm5 = vcmp.eq.s32.totalorder %v1974_v9, 1 }
 0x67c   : > { %v1847_v56 = vpack.c.bf16 %v1841_v54, %v1840_v7 }
 0x67d   : > { %v1846_v42 = vpack.c.bf16 %v1839_v38, %v1838_v5  ;;  %2111 = vrot.lane.b32.xlu1 %v1682_v24, %s2986_s30 }
 0x67f   : > { %2113 = vrot.lane.b32.xlu0 %v1685_v63, %s2986_s30  ;;  %2704 = vmatprep.mubr.msk.bf16.mxu0 %vm1748_vm15, %v1846_v42 }
 0x680   : > { %2705 = vmatmul.mubr.msk.bf16.vlgmr.msra.gmra.mrb[36].mxu0 %vm1748_vm15, %v1847_v56 }
 0x681   : > { %v2678_v36 = vpop.f32.mrb[32].mxu0 }
 0x682   : > { %v1698_v43 = vadd.f32 %v2678_v36, %v1614_v21  ;;  %v1689_v48 = vpop.f32.mrb[33].mxu0 }
 0x683   : > { %v1690_v20 = vadd.f32 %v1689_v48, %v1614_v21  ;;  %v2679_v12 = vpop.f32.mrb[34].mxu0 }
 0x684   : > { %v1844_v16 = vmul.f32 %v1836_v32, %v1698_v43  ;;  %v1701_v52 = vadd.f32 %v2679_v12, %v1614_v21  ;;  %v1692_v49 = vpop.f32.mrb[35].mxu0 }
 0x685   : > { %v1842_v29 = vmul.f32 %v1834_v37, %v1690_v20  ;;  %v1693_v13 = vadd.f32 %v1692_v49, %v1614_v21  ;;  %2115 = vrot.lane.b32.xlu1 %v1690_v20, %s2986_s30 }
 0x686   : > { %v1845_v50 = vmul.f32 %v1837_v39, %v1701_v52 }
 0x687   : > { %v1843_v10 = vmul.f32 %v1835_v30, %v1693_v13  ;;  %2117 = vrot.lane.b32.xlu0 %v1693_v13, %s2986_s30 }
 0x688   : > { %v1849_v34 = vpack.c.bf16 %v1845_v50, %v1844_v16 }
 0x689   : > { %v1848_v14 = vpack.c.bf16 %v1843_v10, %v1842_v29  ;;  %2119 = vrot.lane.b32.xlu1 %v1698_v43, %s2986_s30 }
 0x68b   : > { %2121 = vrot.lane.b32.xlu0 %v1701_v52, %s2986_s30  ;;  %2708 = vmatprep.mubr.msk.bf16.mxu0 %vm1748_vm15, %v1848_v14 }
 0x68c   : > { %2709 = vmatmul.mubr.msk.bf16.gmra.mrb[40].mxu0 %vm1748_vm15, %v1849_v34 }
 0x753   : > { %v2706_v25 = vpop.f32.mrb[36].mxu0 }
 0x754   : > { %v1985_v23 = vsel %vm1977_vm13, %v2706_v25, -1e+09  ;;  %v1920_v8 = vpop.f32.mrb[37].mxu0 }
 0x755   : > { %v1983_v26 = vsel %vm1975_vm14, %v1920_v8, -1e+09  ;;  %v2707_v57 = vpop.f32.mrb[38].mxu0  ;;  %v2000_v53 = vsel %vm1748_vm15, %v1985_v23, -inf }
 0x756   : > { %v1986_v15 = vsel %vm1978_vm0, %v2707_v57, -1e+09  ;;  %v1923_v0 = vpop.f32.mrb[39].mxu0  ;;  %v1991_v27 = vsel %vm1748_vm15, %v1983_v26, -inf }
 0x757   : > { %v2001_v1 = vsel %vm1748_vm15, %v1986_v15, -inf  ;;  %v1984_v40 = vsel %vm1976_vm2, %v1923_v0, -1e+09 }
 0x758   : > { %v2002_v28 = vmax.f32 %v2000_v53, %v2001_v1  ;;  %v1992_v3 = vsel %vm1748_vm15, %v1984_v40, -inf }
 0x759   : > { %v1993_v46 = vmax.f32 %v1991_v27, %v1992_v3 }
 0x75a   : > { %v2003_v17 = vrot.slane %v2002_v28, 4 }
 0x75b   : > { %v1994_v58 = vrot.slane %v1993_v46, 4 }
 0x75c   : > { %v2004_v21 = vmax.f32 %v2002_v28, %v2003_v17 }
 0x75d   : > { %v1995_v55 = vmax.f32 %v1993_v46, %v1994_v58 }
 0x75e   : > { %v2005_v2 = vrot.slane %v2004_v21, 2 }
 0x75f   : > { %v1996_v24 = vrot.slane %v1995_v55, 2  ;;  %v2710_v11 = vpop.f32.mrb[40].mxu0 }
 0x760   : > { %v2006_v51 = vmax.f32 %v2004_v21, %v2005_v2  ;;  %v1989_v6 = vsel %vm1981_vm3, %v2710_v11, -1e+09  ;;  %v1936_v33 = vpop.f32.mrb[41].mxu0 }
 0x761   : > { %v1997_v7 = vmax.f32 %v1995_v55, %v1996_v24  ;;  %v1987_v63 = vsel %vm1979_vm4, %v1936_v33, -1e+09  ;;  %v2711_v31 = vpop.f32.mrb[42].mxu0  ;;  %v2018_v56 = vsel %vm1748_vm15, %v1989_v6, -inf }
 0x762   : > { %v2007_v5 = vrot.slane %v2006_v51, 1  ;;  %v1990_v35 = vsel %vm1982_vm5, %v2711_v31, -1e+09  ;;  %v1939_v54 = vpop.f32.mrb[43].mxu0  ;;  %v2009_v37 = vsel %vm1748_vm15, %v1987_v63, -inf }
 0x763   : > { %v1998_v38 = vrot.slane %v1997_v7, 1  ;;  %v2019_v42 = vsel %vm1748_vm15, %v1990_v35, -inf  ;;  %v1988_v32 = vsel %vm1980_vm6, %v1939_v54, -1e+09 }
 0x764   : > { %v2008_v36 = vmax.f32 %v2006_v51, %v2007_v5  ;;  %v2020_v43 = vmax.f32 %v2018_v56, %v2019_v42  ;;  %v2010_v48 = vsel %vm1748_vm15, %v1988_v32, -inf }
 0x765   : > { %v1999_v20 = vmax.f32 %v1997_v7, %v1998_v38  ;;  %v2011_v12 = vmax.f32 %v2009_v37, %v2010_v48 }
 0x766   : > { %v2029_v16 = vsub.f32 %v1985_v23, %v2008_v36  ;;  %v2030_v52 = vsub.f32 %v1986_v15, %v2008_v36  ;;  %v2021_v39 = vrot.slane %v2020_v43, 4 }
 0x767   : > { %v2027_v49 = vsub.f32 %v1983_v26, %v1999_v20  ;;  %v2028_v29 = vsub.f32 %v1984_v40, %v1999_v20  ;;  %v2012_v13 = vrot.slane %v2011_v12, 4 }
 0x768   : > { %v2039_v30 = vmul.f32 1.442695, %v2029_v16  ;;  %v2041_v50 = vmul.f32 1.442695, %v2030_v52  ;;  %v2022_v10 = vmax.f32 %v2020_v43, %v2021_v39  ;;  %v2108_v39 = vpop.permute.xlu1 %2107 }
 0x769   : > { %v2035_v34 = vmul.f32 1.442695, %v2027_v49  ;;  %v2037_v14 = vmul.f32 1.442695, %v2028_v29  ;;  %v2013_v4 = vmax.f32 %v2011_v12, %v2012_v13  ;;  %v2110_v49 = vpop.permute.xlu0 %2109 }
 0x76a   : > { %2936 = vpow2.f32 %v2039_v30  ;;  %v2023_v47 = vrot.slane %v2022_v10, 2 }
 0x76b   : > { %2938 = vpow2.f32 %v2041_v50  ;;  %v2014_v19 = vrot.slane %v2013_v4, 2 }
 0x76c   : > { %2940 = vpow2.f32 %v2035_v34  ;;  %v2024_v60 = vmax.f32 %v2022_v10, %v2023_v47 }
 0x76d   : > { %2942 = vpow2.f32 %v2037_v14  ;;  %v2015_v44 = vmax.f32 %v2013_v4, %v2014_v19 }
 0x76e   : > { %v2025_v22 = vrot.slane %v2024_v60, 1 }
 0x76f   : > { %v2016_v62 = vrot.slane %v2015_v44, 1 }
 0x770   : > { %v2026_v59 = vmax.f32 %v2024_v60, %v2025_v22  ;;  %v2112_v60 = vpop.permute.xlu1 %2111 }
 0x771   : > { %v2017_v25 = vmax.f32 %v2015_v44, %v2016_v62  ;;  %v2114_v44 = vpop.permute.xlu0 %2113 }
 0x772   : > { %v2033_v23 = vsub.f32 %v1989_v6, %v2026_v59  ;;  %v2034_v8 = vsub.f32 %v1990_v35, %v2026_v59 }
 0x773   : > { %v2031_v26 = vsub.f32 %v1987_v63, %v2017_v25  ;;  %v2032_v57 = vsub.f32 %v1988_v32, %v2017_v25 }
 0x774   : > { %v2937_v15 = vpop.eup %2936  ;;  %v2047_v0 = vmul.f32 1.442695, %v2033_v23  ;;  %v2049_v53 = vmul.f32 1.442695, %v2034_v8 }
 0x775   : > { %v2939_v1 = vpop.eup %2938  ;;  %v2060_v40 = vsel %vm1748_vm15, %v2937_v15, 0.0  ;;  %v2043_v61 = vmul.f32 1.442695, %v2031_v26  ;;  %v2045_v27 = vmul.f32 1.442695, %v2032_v57 }
 0x776   : > { %v2941_v28 = vpop.eup %2940  ;;  %v2061_v3 = vsel %vm1748_vm15, %v2939_v1, 0.0  ;;  %2944 = vpow2.f32 %v2047_v0 }
 0x777   : > { %v2943_v46 = vpop.eup %2942  ;;  %v2062_v45 = vadd.f32 %v2061_v3, %v2060_v40  ;;  %v2051_v17 = vsel %vm1748_vm15, %v2941_v28, 0.0  ;;  %2946 = vpow2.f32 %v2049_v53  ;;  %v2116_v53 = vpop.permute.xlu1 %2115 }
 0x778   : > { %v2052_v58 = vsel %vm1748_vm15, %v2943_v46, 0.0  ;;  %2948 = vpow2.f32 %v2043_v61  ;;  %v2118_v40 = vpop.permute.xlu0 %2117 }
 0x779   : > { %v2063_v21 = vrot.slane %v2062_v45, 4  ;;  %v2053_v55 = vadd.f32 %v2052_v58, %v2051_v17  ;;  %2950 = vpow2.f32 %v2045_v27 }
 0x77b   : > { %v2064_v41 = vadd.f32 %v2063_v21, %v2062_v45  ;;  %v2054_v2 = vrot.slane %v2053_v55, 4  ;;  %v2120_v3 = vpop.permute.xlu1 %2119 }
 0x77c   : > { %v2122_v45 = vpop.permute.xlu0 %2121 }
 0x77d   : > { %v2065_v24 = vrot.slane %v2064_v41, 2  ;;  %v2055_v11 = vadd.f32 %v2054_v2, %v2053_v55 }
 0x77f   : > { %v2066_v9 = vadd.f32 %v2065_v24, %v2064_v41  ;;  %v2056_v51 = vrot.slane %v2055_v11, 2 }
 0x780   : > { %v2945_v6 = vpop.eup %2944 }
 0x781   : > { %v2947_v33 = vpop.eup %2946  ;;  %v2067_v7 = vrot.slane %v2066_v9, 1  ;;  %v2057_v63 = vadd.f32 %v2056_v51, %v2055_v11  ;;  %v2078_v31 = vsel %vm1748_vm15, %v2945_v6, 0.0 }
 0x782   : > { %v2949_v5 = vpop.eup %2948  ;;  %v2079_v35 = vsel %vm1748_vm15, %v2947_v33, 0.0 }
 0x783   : > { %v2951_v54 = vpop.eup %2950  ;;  %v2068_v38 = vadd.f32 %v2067_v7, %v2066_v9  ;;  %v2058_v56 = vrot.slane %v2057_v63, 1  ;;  %v2080_v42 = vadd.f32 %v2079_v35, %v2078_v31  ;;  %v2069_v32 = vsel %vm1748_vm15, %v2949_v5, 0.0 }
 0x784   : > { %v2070_v36 = vsel %vm1748_vm15, %v2951_v54, 0.0 }
 0x785   : > { %2952 = vrcp.f32 %v2068_v38  ;;  %v2059_v37 = vadd.f32 %v2058_v56, %v2057_v63  ;;  %v2081_v43 = vrot.slane %v2080_v42, 4  ;;  %v2071_v48 = vadd.f32 %v2070_v36, %v2069_v32 }
 0x787   : > { %2954 = vrcp.f32 %v2059_v37  ;;  %v2082_v20 = vadd.f32 %v2081_v43, %v2080_v42  ;;  %v2072_v12 = vrot.slane %v2071_v48, 4 }
 0x789   : > { %v2083_v16 = vrot.slane %v2082_v20, 2  ;;  %v2073_v52 = vadd.f32 %v2072_v12, %v2071_v48 }
 0x78b   : > { %v2084_v29 = vadd.f32 %v2083_v16, %v2082_v20  ;;  %v2074_v13 = vrot.slane %v2073_v52, 2 }
 0x78d   : > { %v2085_v30 = vrot.slane %v2084_v29, 1  ;;  %v2075_v50 = vadd.f32 %v2074_v13, %v2073_v52 }
 0x78f   : > { %v2953_v10 = vpop.eup %2952  ;;  %v2086_v34 = vadd.f32 %v2085_v30, %v2084_v29  ;;  %v2076_v14 = vrot.slane %v2075_v50, 1 }
 0x790   : > { %v2093_v4 = vmul.f32 %v2953_v10, %v2937_v15  ;;  %v2094_v47 = vmul.f32 %v2953_v10, %v2939_v1 }
 0x791   : > { %v2955_v19 = vpop.eup %2954  ;;  %2956 = vrcp.f32 %v2086_v34  ;;  %v2077_v22 = vadd.f32 %v2076_v14, %v2075_v50 }
 0x792   : > { %v2134_v62 = vmul.f32 %v2114_v44, %v2094_v47  ;;  %v2091_v59 = vmul.f32 %v2955_v19, %v2941_v28  ;;  %v2092_v25 = vmul.f32 %v2955_v19, %v2943_v46  ;;  %v2133_v23 = vmul.f32 %v2112_v60, %v2093_v4 }
 0x793   : > { %2958 = vrcp.f32 %v2077_v22 }
 0x794   : > { %v2131_v8 = vmul.f32 %v2108_v39, %v2091_v59  ;;  %v2132_v26 = vmul.f32 %v2110_v49, %v2092_v25  ;;  %v2140_v57 = vpack.c.bf16 %v2134_v62, %v2133_v23 }
 0x796   : > { %v2139_v0 = vpack.c.bf16 %v2132_v26, %v2131_v8 }
 0x798   : > { %2720 = vmatprep.mubr.msk.bf16.mxu1 %vm1748_vm15, %v2139_v0 }
 0x799   : > { %2721 = vmatmul.mubr.msk.bf16.vlgmr.msra.gmra.mrb[36].mxu1 %vm1748_vm15, %v2140_v57 }
 0x79b   : > { %v2957_v15 = vpop.eup %2956 }
 0x79c   : > { %v2097_v1 = vmul.f32 %v2957_v15, %v2945_v6  ;;  %v2098_v61 = vmul.f32 %v2957_v15, %v2947_v33 }
 0x79d   : > { %v2959_v27 = vpop.eup %2958 }
 0x79e   : > { %v2095_v28 = vmul.f32 %v2959_v27, %v2949_v5  ;;  %v2096_v46 = vmul.f32 %v2959_v27, %v2951_v54  ;;  %v2137_v17 = vmul.f32 %v2120_v3, %v2097_v1  ;;  %v2138_v58 = vmul.f32 %v2122_v45, %v2098_v61 }
 0x7a0   : > { %v2135_v21 = vmul.f32 %v2116_v53, %v2095_v28  ;;  %v2136_v55 = vmul.f32 %v2118_v40, %v2096_v46  ;;  %v2142_v41 = vpack.c.bf16 %v2138_v58, %v2137_v17 }
 0x7a2   : > { %v2141_v2 = vpack.c.bf16 %v2136_v55, %v2135_v21 }
 0x7a4   : > { %2724 = vmatprep.mubr.msk.bf16.mxu1 %vm1748_vm15, %v2141_v2 }
 0x7a5   : > { %2725 = vmatmul.mubr.msk.bf16.gmra.mrb[40].mxu1 %vm1748_vm15, %v2142_v41  ;;  %vm2284_vm15 = vcmask 257027  }
 0x86c   : > { %v2722_v24 = vpop.f32.mrb[36].mxu1 }
 0x86d   : > { %v2213_v11 = vpop.f32.mrb[37].mxu1  ;;  %v2253_v51 = vsel %vm971_vm1, %v2722_v24, 0.0 }
 0x86e   : > { %v2723_v9 = vpop.f32.mrb[38].mxu1  ;;  %v2244_v7 = vsel %vm971_vm1, %v2213_v11, 0.0 }
 0x86f   : > { %v2254_v6 = vsel %vm971_vm1, %v2723_v9, 0.0  ;;  %v2216_v33 = vpop.f32.mrb[39].mxu1 }
 0x870   : > { %v2255_v63 = vadd.f32 %v2254_v6, %v2253_v51  ;;  %v2245_v31 = vsel %vm971_vm1, %v2216_v33, 0.0 }
 0x871   : > { %v2246_v5 = vadd.f32 %v2245_v31, %v2244_v7 }
 0x872   : > { %v2256_v35 = vrot.slane %v2255_v63, 4 }
 0x873   : > { %v2247_v54 = vrot.slane %v2246_v5, 4 }
 0x874   : > { %v2257_v38 = vadd.f32 %v2256_v35, %v2255_v63 }
 0x875   : > { %v2248_v56 = vadd.f32 %v2247_v54, %v2246_v5 }
 0x876   : > { %v2258_v42 = vrot.slane %v2257_v38, 2 }
 0x877   : > { %v2249_v32 = vrot.slane %v2248_v56, 2 }
 0x878   : > { %v2259_v36 = vadd.f32 %v2258_v42, %v2257_v38  ;;  %v2726_v37 = vpop.f32.mrb[40].mxu1 }
 0x879   : > { %v2250_v43 = vadd.f32 %v2249_v32, %v2248_v56  ;;  %v2229_v48 = vpop.f32.mrb[41].mxu1  ;;  %v2271_v52 = vsel %vm971_vm1, %v2726_v37, 0.0 }
 0x87a   : > { %v2260_v20 = vrot.slane %v2259_v36, 1  ;;  %v2727_v12 = vpop.f32.mrb[42].mxu1  ;;  %v2262_v29 = vsel %vm971_vm1, %v2229_v48, 0.0 }
 0x87b   : > { %v2251_v16 = vrot.slane %v2250_v43, 1  ;;  %v2272_v39 = vsel %vm971_vm1, %v2727_v12, 0.0  ;;  %v2232_v49 = vpop.f32.mrb[43].mxu1 }
 0x87c   : > { %v2273_v13 = vadd.f32 %v2272_v39, %v2271_v52  ;;  %v2263_v30 = vsel %vm971_vm1, %v2232_v49, 0.0  ;;  %v2261_v50 = vadd.f32 %v2260_v20, %v2259_v36  ;;  %v2345_v52 = vrot.slane %v3387_v18, 2 }
 0x87d   : > { %v2264_v10 = vadd.f32 %v2263_v30, %v2262_v29  ;;  %v2252_v34 = vadd.f32 %v2251_v16, %v2250_v43  ;;  %v2339_v43 = vrot.slane %v3387_v18, 1 }
 0x87e   : > { %v2274_v14 = vrot.slane %v2273_v13, 4  ;;  %v2281_v4 = vadd.f32 %v2261_v50, %v3387_v18 }
 0x87f   : > { %v2265_v47 = vrot.slane %v2264_v10, 4  ;;  %v2280_v19 = vadd.f32 %v2252_v34, %v3387_v18 }
 0x880   : > { %v2275_v60 = vadd.f32 %v2274_v14, %v2273_v13  ;;  %v2288_v44 = vsel %vm2284_vm15, %v2281_v4, 0.0 }
 0x881   : > { %v2266_v22 = vadd.f32 %v2265_v47, %v2264_v10  ;;  %2289 = vadd.xlane.f32.xlu0 %v2288_v44  ;;  %v2285_v62 = vsel %vm2284_vm15, %v2280_v19, 0.0 }
 0x882   : > { %v2276_v59 = vrot.slane %v2275_v60, 2  ;;  %2286 = vadd.xlane.f32.xlu1 %v2285_v62 }
 0x883   : > { %v2267_v25 = vrot.slane %v2266_v22, 2 }
 0x884   : > { %v2277_v23 = vadd.f32 %v2276_v59, %v2275_v60 }
 0x885   : > { %v2268_v8 = vadd.f32 %v2267_v25, %v2266_v22 }
 0x886   : > { %v2278_v26 = vrot.slane %v2277_v23, 1 }
 0x887   : > { %v2269_v57 = vrot.slane %v2268_v8, 1 }
 0x888   : > { %v2279_v0 = vadd.f32 %v2278_v26, %v2277_v23 }
 0x889   : > { %v2270_v53 = vadd.f32 %v2269_v57, %v2268_v8 }
 0x88a   : > { %v2283_v40 = vadd.f32 %v2279_v0, %v3387_v18 }
 0x88b   : > { %v2282_v15 = vadd.f32 %v2270_v53, %v3387_v18 }
 0x88c   : > { %v2294_v1 = vsel %vm2284_vm15, %v2283_v40, 0.0 }
 0x88d   : > { %2295 = vadd.xlane.f32.xlu1 %v2294_v1  ;;  %v2291_v61 = vsel %vm2284_vm15, %v2282_v15, 0.0 }
 0x88e   : > { %2292 = vadd.xlane.f32.xlu0 %v2291_v61 }
 0x90e   : > { %v2290_v27 = vpop.xlane.xlu0 %2289 }
 0x90f   : > { %v2299_v3 = vmul.f32 0.03125, %v2290_v27  ;;  %v2287_v45 = vpop.xlane.xlu1 %2286 }
 0x910   : > { %v2298_v28 = vmul.f32 0.03125, %v2287_v45 }
 0x911   : > { %v2303_v46 = vsub.f32 %v2281_v4, %v2299_v3 }
 0x912   : > { %v2302_v17 = vsub.f32 %v2280_v19, %v2298_v28 }
 0x913   : > { %v2307_v58 = vmul.f32 %v2303_v46, %v2303_v46 }
 0x914   : > { %v2306_v21 = vmul.f32 %v2302_v17, %v2302_v17 }
 0x915   : > { %v2313_v55 = vsel %vm2284_vm15, %v2307_v58, 0.0 }
 0x916   : > { %2314 = vadd.xlane.f32.xlu1 %v2313_v55  ;;  %v2310_v41 = vsel %vm2284_vm15, %v2306_v21, 0.0 }
 0x917   : > { %2311 = vadd.xlane.f32.xlu0 %v2310_v41 }
 0x91a   : > { %v2296_v2 = vpop.xlane.xlu1 %2295 }
 0x91b   : > { %v2301_v24 = vmul.f32 0.03125, %v2296_v2  ;;  %v2293_v11 = vpop.xlane.xlu0 %2292 }
 0x91c   : > { %v2300_v9 = vmul.f32 0.03125, %v2293_v11 }
 0x91d   : > { %v2305_v51 = vsub.f32 %v2283_v40, %v2301_v24 }
 0x91e   : > { %v2304_v6 = vsub.f32 %v2282_v15, %v2300_v9 }
 0x91f   : > { %v2309_v33 = vmul.f32 %v2305_v51, %v2305_v51 }
 0x920   : > { %v2308_v7 = vmul.f32 %v2304_v6, %v2304_v6 }
 0x921   : > { %v2319_v63 = vsel %vm2284_vm15, %v2309_v33, 0.0 }
 0x922   : > { %2320 = vadd.xlane.f32.xlu1 %v2319_v63  ;;  %v2316_v31 = vsel %vm2284_vm15, %v2308_v7, 0.0 }
 0x923   : > { %2317 = vadd.xlane.f32.xlu0 %v2316_v31 }
 0x9a3   : > { %v2315_v5 = vpop.xlane.xlu1 %2314 }
 0x9a4   : > { %v2323_v35 = vmul.f32 0.03125, %v2315_v5  ;;  %v2312_v54 = vpop.xlane.xlu0 %2311 }
 0x9a5   : > { %v2322_v38 = vmul.f32 0.03125, %v2312_v54 }
 0x9a6   : > { %v2327_v56 = vadd.f32 1e-05, %v2323_v35 }
 0x9a7   : > { %v2326_v42 = vadd.f32 1e-05, %v2322_v38 }
 0x9a8   : > { %2960 = vrsqrt.f32 %v2327_v56 }
 0x9a9   : > { %2962 = vrsqrt.f32 %v2326_v42 }
 0x9af   : > { %v2321_v32 = vpop.xlane.xlu1 %2320 }
 0x9b0   : > { %v2325_v36 = vmul.f32 0.03125, %v2321_v32  ;;  %v2318_v37 = vpop.xlane.xlu0 %2317 }
 0x9b1   : > { %v2324_v48 = vmul.f32 0.03125, %v2318_v37 }
 0x9b2   : > { %v2961_v20 = vpop.eup %2960  ;;  %v2329_v12 = vadd.f32 1e-05, %v2325_v36 }
 0x9b3   : > { %v2963_v16 = vpop.eup %2962  ;;  %v2335_v39 = vmul.f32 %v2961_v20, %v2303_v46  ;;  %v2328_v49 = vadd.f32 1e-05, %v2324_v48 }
 0x9b4   : > { %v2334_v29 = vmul.f32 %v2963_v16, %v2302_v17  ;;  %2964 = vrsqrt.f32 %v2329_v12 }
 0x9b5   : > { %v2342_v13 = vmul.f32 %v2339_v43, %v2335_v39  ;;  %2966 = vrsqrt.f32 %v2328_v49 }
 0x9b6   : > { %v2341_v30 = vmul.f32 %v2339_v43, %v2334_v29 }
 0x9b7   : > { %v2348_v50 = vadd.f32 %v2345_v52, %v2342_v13 }
 0x9b8   : > { %v2347_v10 = vadd.f32 %v2345_v52, %v2341_v30 }
 0x9b9   : > { %v2356_v34 = vmul.f32 0.01, %v2348_v50  ;;  %vm2352_vm1 = vcmp.gt.f32.partialorder %v2348_v50, 0.0 }
 0x9ba   : > { %vm2351_vm7 = vcmp.gt.f32.partialorder %v2347_v10, 0.0  ;;  %v2355_v14 = vmul.f32 0.01, %v2347_v10 }
 0x9bb   : > { %v2360_v47 = vsel %vm2352_vm1, %v2348_v50, %v2356_v34 }
 0x9bc   : > { %v2359_v4 = vsel %vm2351_vm7, %v2347_v10, %v2355_v14  ;;  %2364 = vst.msk [vmem:[%s3613_s5 + $0x25] sm:$0x8] %vm2284_vm15, %v2360_v47 }
 0x9bd   : > { %2363 = vst.msk [vmem:[%s3613_s5 + $0xd] sm:$0x8] %vm2284_vm15, %v2359_v4 }
 0x9be   : > { %v2965_v18 = vpop.eup %2964 }
 0x9bf   : > { %v2967_v19 = vpop.eup %2966  ;;  %v2337_v60 = vmul.f32 %v2965_v18, %v2305_v51 }
 0x9c0   : > { %v2336_v44 = vmul.f32 %v2967_v19, %v2304_v6 }
 0x9c1   : > { %v2344_v22 = vmul.f32 %v2339_v43, %v2337_v60 }
 0x9c2   : > { %v2343_v62 = vmul.f32 %v2339_v43, %v2336_v44 }
 0x9c3   : > { %v2350_v59 = vadd.f32 %v2345_v52, %v2344_v22 }
 0x9c4   : > { %v2349_v25 = vadd.f32 %v2345_v52, %v2343_v62 }
 0x9c5   : > { %v2358_v23 = vmul.f32 0.01, %v2350_v59  ;;  %vm2354_vm9 = vcmp.gt.f32.partialorder %v2350_v59, 0.0 }
 0x9c6   : > { %vm2353_vm10 = vcmp.gt.f32.partialorder %v2349_v25, 0.0  ;;  %v2357_v8 = vmul.f32 0.01, %v2349_v25 }
 0x9c7   : > { %v2362_v57 = vsel %vm2354_vm9, %v2350_v59, %v2358_v23 }
 0x9c8   : > { %v2361_v26 = vsel %vm2353_vm10, %v2349_v25, %v2357_v8  ;;  %2366 = vst.msk [vmem:[%s3613_s5 + $0x55] sm:$0x8] %vm2284_vm15, %v2362_v57 }
 0x9c9   : > { %2365 = vst.msk [vmem:[%s3613_s5 + $0x3d] sm:$0x8] %vm2284_vm15, %v2361_v26 }
 0x9ca PF: > { %s14_s15 = sadd.s32 1, %s2982_s15  }
 0x9cb   : > { %p11_p4 = scmp.ge.s32.totalorder %s14_s15, 4  }
 0x9cd   :  { %13 = sbr.rel (!%p11_p4) target bundleno = 1 (0x1), region = 72 }

</bundles_post_ra>
